<compile_context>
chip_gen: v6e
topology: v6e:2x2x1
jax: 0.10.0
libtpu: 0.0.40
codegen_flags: <defaults>
</compile_context>

<pallas_src>
import functools
import math

import numpy as np
import jax
import jax.numpy as jnp
from jax.experimental import pallas as pl
from jax.experimental.pallas import tpu as pltpu


_A_CUBIC = -0.75


def _round_up(v, m):
    return ((v + m - 1) // m) * m


# ----------------------------------------------------------------------------
# Host-side interpolation-matrix construction (float64, mirrors ATen upsample).
# ----------------------------------------------------------------------------
def _scale_value(in_size, out_size, sf_passed):
    # ATen compute_scales_value: 1/scale when a scale factor was forwarded to
    # the backend (recompute_scale_factor not True), else in/out.
    if sf_passed is not None and sf_passed > 0:
        return 1.0 / sf_passed
    return in_size / out_size


def _nearest_matrix(in_size, out_size, sf_passed):
    scale = _scale_value(in_size, out_size, sf_passed)
    d = np.arange(out_size, dtype=np.float64)
    src = np.minimum(np.floor(d * scale).astype(np.int64), in_size - 1)
    M = np.zeros((in_size, out_size), dtype=np.float64)
    M[src, np.arange(out_size)] = 1.0
    return M


def _linear_matrix(in_size, out_size, align_corners, sf_passed):
    M = np.zeros((in_size, out_size), dtype=np.float64)
    if in_size == out_size and sf_passed is None:
        M[np.arange(out_size), np.arange(out_size)] = 1.0
        return M
    d = np.arange(out_size, dtype=np.float64)
    if align_corners:
        scale = (in_size - 1) / (out_size - 1) if out_size > 1 else 0.0
        src = d * scale
    else:
        scale = _scale_value(in_size, out_size, sf_passed) if out_size > 1 else 0.0
        src = np.maximum(scale * (d + 0.5) - 0.5, 0.0)
    i0 = np.minimum(src.astype(np.int64), in_size - 1)
    i1 = i0 + (i0 < in_size - 1).astype(np.int64)
    l1 = src - i0
    l0 = 1.0 - l1
    cols = np.arange(out_size)
    np.add.at(M, (i0, cols), l0)
    np.add.at(M, (i1, cols), l1)
    return M


def _cubic_weights(t):
    A = _A_CUBIC

    def c1(x):
        return ((A + 2.0) * x - (A + 3.0)) * x * x + 1.0

    def c2(x):
        return ((A * x - 5.0 * A) * x + 8.0 * A) * x - 4.0 * A

    return np.stack([c2(t + 1.0), c1(t), c1(1.0 - t), c2(2.0 - t)])


def _cubic_matrix(in_size, out_size, align_corners, sf_passed):
    d = np.arange(out_size, dtype=np.float64)
    if align_corners:
        scale = (in_size - 1) / (out_size - 1) if out_size > 1 else 0.0
        src = d * scale
    else:
        scale = _scale_value(in_size, out_size, sf_passed) if out_size > 1 else 0.0
        src = scale * (d + 0.5) - 0.5  # NOT clamped for bicubic
    base = np.floor(src).astype(np.int64)
    t = src - base
    wts = _cubic_weights(t)  # (4, out)
    M = np.zeros((in_size, out_size), dtype=np.float64)
    cols = np.arange(out_size)
    for k in range(4):
        idx = np.clip(base - 1 + k, 0, in_size - 1)
        np.add.at(M, (idx, cols), wts[k])
    return M


def _make_matrix(mode, in_size, out_size, align_corners, sf_passed):
    ac = bool(align_corners) if align_corners is not None else False
    if mode == 'nearest':
        return _nearest_matrix(in_size, out_size, sf_passed)
    if mode in ('linear', 'bilinear'):
        return _linear_matrix(in_size, out_size, ac, sf_passed)
    if mode == 'bicubic':
        return _cubic_matrix(in_size, out_size, ac, sf_passed)
    raise ValueError(f"unsupported mode {mode}")


def _resolve_sizes(in_sizes, size, scale_factor, recompute_scale_factor):
    nsp = len(in_sizes)
    if size is not None:
        if isinstance(size, (tuple, list)):
            out_sizes = tuple(int(s) for s in size)
        else:
            out_sizes = (int(size),) * nsp
        sf_passed = (None,) * nsp
    else:
        if isinstance(scale_factor, (tuple, list)):
            sfs = tuple(float(s) for s in scale_factor)
        else:
            sfs = (float(scale_factor),) * nsp
        out_sizes = tuple(int(math.floor(in_sizes[i] * sfs[i])) for i in range(nsp))
        # scale factors are forwarded to the backend only when NOT recomputed
        sf_passed = (None,) * nsp if recompute_scale_factor else sfs
    return out_sizes, sf_passed


class _Chain1D:
    """Composes a chain of 1D interpolate() calls into one (W_in, W_out) matrix."""

    def __init__(self, w):
        self.w = w
        self.M = np.eye(w, dtype=np.float64)

    def interpolate(self, size=None, scale_factor=None, mode='nearest',
                    align_corners=None, recompute_scale_factor=None):
        (out_w,), (sf_w,) = _resolve_sizes((self.w,), size, scale_factor,
                                           recompute_scale_factor)
        self.M = self.M @ _make_matrix(mode, self.w, out_w, align_corners, sf_w)
        self.w = out_w


class _Chain2D:
    """Composes a chain of 2D interpolate() calls into per-axis matrices."""

    def __init__(self, h, w):
        self.h, self.w = h, w
        self.Mh = np.eye(h, dtype=np.float64)
        self.Mw = np.eye(w, dtype=np.float64)

    def interpolate(self, size=None, scale_factor=None, mode='nearest',
                    align_corners=None, recompute_scale_factor=None):
        (out_h, out_w), (sf_h, sf_w) = _resolve_sizes(
            (self.h, self.w), size, scale_factor, recompute_scale_factor)
        self.Mh = self.Mh @ _make_matrix(mode, self.h, out_h, align_corners, sf_h)
        self.Mw = self.Mw @ _make_matrix(mode, self.w, out_w, align_corners, sf_w)
        self.h, self.w = out_h, out_w


def _build_plan(x_w, y_h, y_w, w_h, w_w):
    """Replays the whole Model.forward chain symbolically (matrix composition)."""
    cx = _Chain1D(x_w)
    cx.interpolate(size=16)
    cx.interpolate(scale_factor=2, mode='nearest')
    cx.interpolate(size=20, mode='nearest')
    cx.interpolate(scale_factor=4, mode='nearest')
    cx.interpolate(size=16, mode='linear')
    cx.interpolate(scale_factor=2, mode='linear')
    cx.interpolate(size=24, mode='linear', align_corners=True)
    cx.interpolate(scale_factor=3, mode='linear', align_corners=True)
    cx.interpolate(scale_factor=1.5, mode='nearest', recompute_scale_factor=True)
    cx.interpolate(scale_factor=1.2, mode='linear', align_corners=False,
                   recompute_scale_factor=True)
    cx.interpolate(scale_factor=0.8, mode='linear', align_corners=True,
                   recompute_scale_factor=True)

    cy = _Chain2D(y_h, y_w)
    cy.interpolate(size=16)
    cy.interpolate(scale_factor=2, mode='nearest')
    cy.interpolate(size=(20, 20), mode='nearest')
    cy.interpolate(scale_factor=(4, 4), mode='nearest')
    cy.interpolate(size=(16, 24), mode='nearest')
    cy.interpolate(scale_factor=(2, 3), mode='nearest')
    cy.interpolate(size=16, mode='bilinear')
    cy.interpolate(scale_factor=2, mode='bilinear')
    cy.interpolate(size=(20, 20), mode='bilinear', align_corners=False)
    cy.interpolate(scale_factor=(4, 4), mode='bilinear', align_corners=False)
    cy.interpolate(size=(16, 24), mode='bilinear', align_corners=True)
    cy.interpolate(scale_factor=(2, 3), mode='bilinear', align_corners=True)
    cy.interpolate(size=16, mode='bicubic')
    cy.interpolate(scale_factor=2, mode='bicubic')
    cy.interpolate(size=(20, 20), mode='bicubic', align_corners=False)
    cy.interpolate(scale_factor=(4, 4), mode='bicubic', align_corners=False)
    cy.interpolate(size=(16, 24), mode='bicubic', align_corners=True)
    cy.interpolate(scale_factor=(2, 3), mode='bicubic', align_corners=True)
    cy.interpolate(scale_factor=(1.6, 2), mode='nearest',
                   recompute_scale_factor=True)
    cy.interpolate(scale_factor=(2, 1.2), mode='bilinear', align_corners=False,
                   recompute_scale_factor=True)
    cy.interpolate(scale_factor=(0.5, 0.4), mode='bilinear', align_corners=True,
                   recompute_scale_factor=True)
    cy.interpolate(scale_factor=(0.8, 0.9), mode='bicubic', align_corners=False,
                   recompute_scale_factor=True)
    cy.interpolate(scale_factor=(1.1, 0.5), mode='bicubic', align_corners=True,
                   recompute_scale_factor=True)

    cw = _Chain2D(w_h, w_w)
    cw.interpolate(scale_factor=(2.976744, 2.976744), mode='nearest',
                   recompute_scale_factor=False)
    return cx, cy, cw


# ----------------------------------------------------------------------------
# Builder: one cached, jitted forward function per input-shape signature.
# Single fused gridless Pallas kernel, 5 matmuls, everything resident in VMEM.
# ----------------------------------------------------------------------------
def _block_diag_T(Mh, n_blocks, h_pad):
    """Block-diagonal stack of Mh.T: batches the per-channel H-axis matmul."""
    h_in, h_out = Mh.shape
    BD = np.zeros((n_blocks * h_pad, n_blocks * h_in), dtype=np.float32)
    MhT = np.ascontiguousarray(Mh.T.astype(np.float32))  # (h_out, h_in)
    for c in range(n_blocks):
        BD[c * h_pad:c * h_pad + h_out, c * h_in:(c + 1) * h_in] = MhT
    return BD


@functools.lru_cache(maxsize=None)
def _build_forward(x_shape, y_shape, w_shape):
    nx, cx_ch, wx = x_shape
    ny, cy_ch, hy, wy = y_shape
    nw, cw_ch, hw, ww = w_shape

    plan_x, plan_y, plan_w = _build_plan(wx, hy, wy, hw, ww)

    # Common lane-dense output width (all three chains share one padded width).
    n_pad = max(_round_up(plan_x.w, 128),
                _round_up(plan_y.w, 128),
                _round_up(plan_w.w, 128))
    hy_pad = _round_up(plan_y.h, 8)
    hw_pad = _round_up(plan_w.h, 8)

    ncy = ny * cy_ch
    ncw = nw * cw_ch
    n_x_rows = nx * cx_ch
    n_y_rows = ncy * hy          # rows of flattened y input / K of BD_y matmul
    n_w_rows = ncw * hw

    def pad_cols(M, cols):
        out = np.zeros((M.shape[0], cols), dtype=np.float32)
        out[:, :M.shape[1]] = M.astype(np.float32)
        return out

    # --- slab 1: the three width-axis matrices, stacked at 8-aligned rows ----
    off_mx = 0
    off_myw = _round_up(wx, 8)
    off_mww = off_myw + _round_up(wy, 8)
    mslab_rows = off_mww + _round_up(ww, 8)
    mslab = np.zeros((mslab_rows, n_pad), dtype=np.float32)
    mslab[off_mx:off_mx + wx] = pad_cols(plan_x.M, n_pad)
    mslab[off_myw:off_myw + wy] = pad_cols(plan_y.Mw, n_pad)
    mslab[off_mww:off_mww + ww] = pad_cols(plan_w.Mw, n_pad)

    # --- slab 2: block-diagonal MhT matrices (channel-batched H-axis matmul) -
    bd_y = _block_diag_T(plan_y.Mh, ncy, hy_pad)     # (ncy*hy_pad, ncy*hy)
    bd_w = _block_diag_T(plan_w.Mh, ncw, hw_pad)     # (ncw*hw_pad, ncw*hw)
    bd_rows_y, bd_ky = bd_y.shape
    bd_rows_w, bd_kw = bd_w.shape
    bd_k = max(bd_ky, bd_kw)
    bd = np.zeros((bd_rows_y + bd_rows_w, bd_k), dtype=np.float32)
    bd[:bd_rows_y, :bd_ky] = bd_y
    bd[bd_rows_y:, :bd_kw] = bd_w

    # Device-resident constants (uploaded once per shape signature).
    mslab_dev = jnp.asarray(mslab)
    bd_dev = jnp.asarray(bd)

    prec = jax.lax.Precision.HIGHEST

    def kernel(x_ref, y_ref, w_ref, mslab_ref, bd_ref, xo_ref, yo_ref, wo_ref):
        # Static slices out of the packed constant slabs (free).
        mx = mslab_ref[off_mx:off_mx + wx, :]
        myw = mslab_ref[off_myw:off_myw + wy, :]
        mww = mslab_ref[off_mww:off_mww + ww, :]
        bdy = bd_ref[0:bd_rows_y, 0:bd_ky]
        bdw = bd_ref[bd_rows_y:bd_rows_y + bd_rows_w, 0:bd_kw]

        # x chain (1D): one matmul.
        xo_ref[...] = jnp.dot(x_ref[...], mx,
                              preferred_element_type=jnp.float32,
                              precision=prec)

        # y chain (2D): width-axis matmul batched over all channels, then the
        # height-axis matmul batched via the block-diagonal MhT.
        ty = jnp.dot(y_ref[...], myw,
                     preferred_element_type=jnp.float32, precision=prec)
        yo_ref[...] = jnp.dot(bdy, ty,
                              preferred_element_type=jnp.float32,
                              precision=prec)

        # w chain (2D): same structure.
        tw = jnp.dot(w_ref[...], mww,
                     preferred_element_type=jnp.float32, precision=prec)
        wo_ref[...] = jnp.dot(bdw, tw,
                              preferred_element_type=jnp.float32,
                              precision=prec)

    # Advisory cost estimate (tiny kernel; keeps XLA from over-serializing).
    flops = 2 * (n_x_rows * wx * n_pad
                 + n_y_rows * wy * n_pad
                 + bd_rows_y * bd_ky * n_pad
                 + n_w_rows * ww * n_pad
                 + bd_rows_w * bd_kw * n_pad)
    bytes_accessed = 4 * (n_x_rows * wx + n_y_rows * wy + n_w_rows * ww
                          + mslab.size + bd.size
                          + n_x_rows * n_pad + bd_rows_y * n_pad
                          + bd_rows_w * n_pad)

    call = pl.pallas_call(
        kernel,
        out_shape=(
            jax.ShapeDtypeStruct((n_x_rows, n_pad), jnp.float32),
            jax.ShapeDtypeStruct((bd_rows_y, n_pad), jnp.float32),
            jax.ShapeDtypeStruct((bd_rows_w, n_pad), jnp.float32),
        ),
        in_specs=[pl.BlockSpec(memory_space=pltpu.MemorySpace.VMEM)] * 5,
        out_specs=(pl.BlockSpec(memory_space=pltpu.MemorySpace.VMEM),) * 3,
        cost_estimate=pl.CostEstimate(flops=flops, transcendentals=0,
                                      bytes_accessed=bytes_accessed),
    )

    out_xw, out_yh, out_yw = plan_x.w, plan_y.h, plan_y.w
    out_wh, out_ww = plan_w.h, plan_w.w

    @jax.jit
    def fwd(x, y, w):
        x2 = x.astype(jnp.float32).reshape(n_x_rows, wx)
        y2 = y.astype(jnp.float32).reshape(n_y_rows, wy)
        w2 = w.astype(jnp.float32).reshape(n_w_rows, ww)
        xo, yo, wo = call(x2, y2, w2, mslab_dev, bd_dev)
        x_out = xo[:, :out_xw].reshape(nx, cx_ch, out_xw)
        y_out = yo.reshape(ncy, hy_pad, n_pad)[:, :out_yh, :out_yw] \
                  .reshape(ny, cy_ch, out_yh, out_yw)
        w_out = wo.reshape(ncw, hw_pad, n_pad)[:, :out_wh, :out_ww] \
                  .reshape(nw, cw_ch, out_wh, out_ww)
        return x_out, y_out, w_out

    return fwd


def model_forward(x, y, w):
    fwd = _build_forward(tuple(x.shape), tuple(y.shape), tuple(w.shape))
    return fwd(x, y, w)


if __name__ == "__main__":
    key = jax.random.PRNGKey(0)
    kx, ky, kw = jax.random.split(key, 3)
    # small shapes consistent with the module (1D spatial for x, 2D for y/w)
    x = jax.random.uniform(kx, (1, 3, 12), dtype=jnp.float32)
    y = jax.random.uniform(ky, (1, 2, 12, 12), dtype=jnp.float32)
    w = jax.random.uniform(kw, (1, 2, 10, 10), dtype=jnp.float32)

    xo, yo, wo = model_forward(x, y, w)
    jax.block_until_ready((xo, yo, wo))

    # shape checks (chain of 46 interpolate steps)
    assert xo.shape == (1, 3, 103), xo.shape
    assert yo.shape == (1, 2, 44, 30), yo.shape
    assert wo.shape == (1, 2, 29, 29), wo.shape

    # numeric sanity check against a pure-numpy float64 application of the
    # same composed linear maps (composition is exact by linearity).
    plan_x, plan_y, plan_w = _build_plan(12, 12, 12, 10, 10)
    x_np = np.asarray(x, dtype=np.float64)
    y_np = np.asarray(y, dtype=np.float64)
    w_np = np.asarray(w, dtype=np.float64)
    x_ref = np.einsum('ncw,wW->ncW', x_np, plan_x.M)
    y_ref = np.einsum('nchw,hH,wW->ncHW', y_np, plan_y.Mh, plan_y.Mw)
    w_ref = np.einsum('nchw,hH,wW->ncHW', w_np, plan_w.Mh, plan_w.Mw)
    assert np.max(np.abs(np.asarray(xo, np.float64) - x_ref)) < 1e-2
    assert np.max(np.abs(np.asarray(yo, np.float64) - y_ref)) < 1e-2
    assert np.max(np.abs(np.asarray(wo, np.float64) - w_ref)) < 1e-2

    print("KERNEL_OK")
</pallas_src>

<mosaic_0001>
module attributes {stable_mosaic.version = 11 : i64} {
  func.func @kernel(%arg0: memref<3x12xf32, #tpu.memory_space<vmem>>, %arg1: memref<24x12xf32, #tpu.memory_space<vmem>>, %arg2: memref<20x10xf32, #tpu.memory_space<vmem>>, %arg3: memref<48x128xf32, #tpu.memory_space<vmem>>, %arg4: memref<160x24xf32, #tpu.memory_space<vmem>>, %arg5: memref<3x128xf32, #tpu.memory_space<vmem>>, %arg6: memref<96x128xf32, #tpu.memory_space<vmem>>, %arg7: memref<64x128xf32, #tpu.memory_space<vmem>>) attributes {dimension_semantics = [], scalar_prefetch = 0 : i64, scratch_operands = 0 : i64, tpu.core_type = #tpu.core_type<tc>} {
    %c0 = arith.constant 0 : index
    %c0_0 = arith.constant 0 : index
    %0 = vector.load %arg3[%c0, %c0_0] : memref<48x128xf32, #tpu.memory_space<vmem>>, vector<12x128xf32>
    %c16 = arith.constant 16 : index
    %c0_1 = arith.constant 0 : index
    %1 = vector.load %arg3[%c16, %c0_1] : memref<48x128xf32, #tpu.memory_space<vmem>>, vector<12x128xf32>
    %c32 = arith.constant 32 : index
    %c0_2 = arith.constant 0 : index
    %2 = vector.load %arg3[%c32, %c0_2] : memref<48x128xf32, #tpu.memory_space<vmem>>, vector<10x128xf32>
    %c0_3 = arith.constant 0 : index
    %c0_4 = arith.constant 0 : index
    %3 = vector.load %arg4[%c0_3, %c0_4] : memref<160x24xf32, #tpu.memory_space<vmem>>, vector<96x24xf32>
    %c96 = arith.constant 96 : index
    %c0_5 = arith.constant 0 : index
    %4 = vector.load %arg4[%c96, %c0_5] : memref<160x24xf32, #tpu.memory_space<vmem>>, vector<64x20xf32>
    %c0_6 = arith.constant 0 : index
    %c0_7 = arith.constant 0 : index
    %5 = vector.load %arg0[%c0_6, %c0_7] : memref<3x12xf32, #tpu.memory_space<vmem>>, vector<3x12xf32>
    %cst = arith.constant dense<0.000000e+00> : vector<3x128xf32>
    %6 = tpu.matmul %5, %0, %cst {dimension_numbers = #tpu.dot_dimension_numbers<[1], [0], [0], [1], [0, 0, 1, 1], [], []>, precision = #tpu.contract_precision<fp32>} : vector<3x12xf32>, vector<12x128xf32>, vector<3x128xf32> -> vector<3x128xf32>
    %c0_8 = arith.constant 0 : index
    %c0_9 = arith.constant 0 : index
    %7 = vector.load %arg5[%c0_8, %c0_9] : memref<3x128xf32, #tpu.memory_space<vmem>>, vector<3x128xf32>
    tpu.vector_store %arg5[%c0_8, %c0_9], %6 {strides = array<i32>} : memref<3x128xf32, #tpu.memory_space<vmem>>, vector<3x128xf32>,
    %c0_10 = arith.constant 0 : index
    %c0_11 = arith.constant 0 : index
    %8 = vector.load %arg1[%c0_10, %c0_11] : memref<24x12xf32, #tpu.memory_space<vmem>>, vector<24x12xf32>
    %cst_12 = arith.constant dense<0.000000e+00> : vector<24x128xf32>
    %9 = tpu.matmul %8, %1, %cst_12 {dimension_numbers = #tpu.dot_dimension_numbers<[1], [0], [0], [1], [0, 0, 1, 1], [], []>, precision = #tpu.contract_precision<fp32>} : vector<24x12xf32>, vector<12x128xf32>, vector<24x128xf32> -> vector<24x128xf32>
    %cst_13 = arith.constant dense<0.000000e+00> : vector<96x128xf32>
    %10 = tpu.matmul %3, %9, %cst_13 {dimension_numbers = #tpu.dot_dimension_numbers<[1], [0], [0], [1], [0, 0, 1, 1], [], []>, precision = #tpu.contract_precision<fp32>} : vector<96x24xf32>, vector<24x128xf32>, vector<96x128xf32> -> vector<96x128xf32>
    %c0_14 = arith.constant 0 : index
    %c0_15 = arith.constant 0 : index
    %11 = vector.load %arg6[%c0_14, %c0_15] : memref<96x128xf32, #tpu.memory_space<vmem>>, vector<96x128xf32>
    tpu.vector_store %arg6[%c0_14, %c0_15], %10 {strides = array<i32>} : memref<96x128xf32, #tpu.memory_space<vmem>>, vector<96x128xf32>,
    %c0_16 = arith.constant 0 : index
    %c0_17 = arith.constant 0 : index
    %12 = vector.load %arg2[%c0_16, %c0_17] : memref<20x10xf32, #tpu.memory_space<vmem>>, vector<20x10xf32>
    %cst_18 = arith.constant dense<0.000000e+00> : vector<20x128xf32>
    %13 = tpu.matmul %12, %2, %cst_18 {dimension_numbers = #tpu.dot_dimension_numbers<[1], [0], [0], [1], [0, 0, 1, 1], [], []>, precision = #tpu.contract_precision<fp32>} : vector<20x10xf32>, vector<10x128xf32>, vector<20x128xf32> -> vector<20x128xf32>
    %cst_19 = arith.constant dense<0.000000e+00> : vector<64x128xf32>
    %14 = tpu.matmul %4, %13, %cst_19 {dimension_numbers = #tpu.dot_dimension_numbers<[1], [0], [0], [1], [0, 0, 1, 1], [], []>, precision = #tpu.contract_precision<fp32>} : vector<64x20xf32>, vector<20x128xf32>, vector<64x128xf32> -> vector<64x128xf32>
    %c0_20 = arith.constant 0 : index
    %c0_21 = arith.constant 0 : index
    %15 = vector.load %arg7[%c0_20, %c0_21] : memref<64x128xf32, #tpu.memory_space<vmem>>, vector<64x128xf32>
    tpu.vector_store %arg7[%c0_20, %c0_21], %14 {strides = array<i32>} : memref<64x128xf32, #tpu.memory_space<vmem>>, vector<64x128xf32>,
    return
  }
}

</mosaic_0001>

<bundles_post_ra>
// kernel: fwd.1
= control target key start
LH: loop header
LB: loop body
LE: loop exit
PB: predicated region body
PF: predicated region fallthrough
CT: control target
= control target key end

     0   :  { %vm54_vm0 = vcmask 1043456   ;;  %vm50_vm1 = vcmask 97280   ;;  %v4141_v0 = vmov 0.0   ;;  %vm4142_vm2 = vmmov 0   ;;  %s5078_s3 = inlined_call_operand.vmem [shape: f32[48,128], index: 3, kind: input, shape index: {}]   ;;  %s5079_s0 = inlined_call_operand.vmem [shape: f32[3,12], index: 0, kind: input, shape index: {}]   ;;  %s5080_s1 = inlined_call_operand.vmem [shape: f32[24,12], index: 1, kind: input, shape index: {}]   ;;  %s5081_s4 = inlined_call_operand.vmem [shape: f32[160,24], index: 4, kind: input, shape index: {}]   ;;  %s5082_s5 = inlined_call_operand.vmem [shape: f32[3,128], index: 5, kind: output, shape index: {0}]   ;;  %s5083_s2 = inlined_call_operand.vmem [shape: f32[20,10], index: 2, kind: input, shape index: {}]   ;;  %s5084_s6 = inlined_call_operand.vmem [shape: f32[96,128], index: 6, kind: output, shape index: {1}]   ;;  %s5085_s7 = inlined_call_operand.vmem [shape: f32[64,128], index: 7, kind: output, shape index: {2}]  }
   0x1   :  { %3689 = vmatprep.subr.mxu0 %v4141_v0  ;;  %v24_v1 = vld [vmem:[%s5078_s3 + $0x8] sm:$0xf]  ;;  %v23_v2 = vld [vmem:[%s5078_s3] sm:$0xff]  ;;  %3693 = vmatprep.mubr.msk.f32.mxu0 %vm4142_vm2, %v4141_v0  ;;  %v26_v10 = vld [vmem:[%s5078_s3 + $0x18] sm:$0xf]  ;;  %vm1078_vm3 = vcmask 195584  }
   0x2   :  { %v49_v3 = vld [vmem:[%s5079_s0] sm:$0x7]  ;;  %v56_v4 = vsel %vm54_vm0, %v24_v1, 0  ;;  %v4196_v5 = vand.u32 4294901760, %v23_v2  ;;  %3696 = vmatprep.subr.mxu1 %v4141_v0  ;;  %3700 = vmatprep.mubr.msk.f32.mxu1 %vm4142_vm2, %v4141_v0  ;;  %v531_v17 = vsel %vm54_vm0, %v26_v10, 0  ;;  %v519_v20 = vld [vmem:[%s5080_s1 + $0x8] sm:$0xff] }
   0x3   :  { %v52_v6 = vsel %vm50_vm1, %v49_v3, 0  ;;  %v4202_v7 = vand.u32 4294901760, %v56_v4  ;;  %v518_v11 = vld [vmem:[%s5080_s1] sm:$0xff]  ;;  %v25_v23 = vld [vmem:[%s5078_s3 + $0x10] sm:$0xff]  ;;  %v4227_v24 = vand.u32 4294901760, %v531_v17  ;;  %v525_v29 = vsel %vm50_vm1, %v519_v20, 0 }
   0x4   :  { %v4204_v8 = vand.u32 4294901760, %v52_v6  ;;  %v172_v9 = vsub.f32 %v23_v2, %v4196_v5  ;;  %v522_v18 = vsel %vm50_vm1, %v518_v11, 0  ;;  %v4232_v30 = vand.u32 4294901760, %v25_v23  ;;  %v520_v31 = vld [vmem:[%s5080_s1 + $0x10] sm:$0xff]  ;;  %v29_v55 = vld [vmem:[%s5081_s4] sm:$0xff] }
   0x5   :  { %3690 = vmatpush3.msra.mxu0 %v4202_v7  ;;  %v165_v13 = vsub.f32 %v56_v4, %v4202_v7  ;;  %v4229_v25 = vand.u32 4294901760, %v522_v18  ;;  %v4239_v32 = vsub.f32 %v531_v17, %v4227_v24  ;;  %v4244_v34 = vand.u32 4294901760, %v525_v29 }
   0x6   :  { %v126_v12 = vsub.f32 %v52_v6, %v4204_v8  ;;  %3691 = vmatprep.subr.mxu0 %v4141_v0  ;;  %v173_v14 = vand.u32 4294901760, %v172_v9  ;;  %v528_v35 = vsel %vm50_vm1, %v520_v31, 0  ;;  %v4250_v36 = vsub.f32 %v25_v23, %v4232_v30 }
   0x7   :  { %3692 = vmatpush3.msra.mxu0 %v4196_v5  ;;  %v166_v16 = vand.u32 4294901760, %v165_v13  ;;  %v4242_v33 = vsub.f32 %v522_v18, %v4229_v25  ;;  %v661_v38 = vand.u32 4294901760, %v4239_v32  ;;  %v4259_v39 = vsub.f32 %v525_v29, %v4244_v34 }
   0x8   :  { %v127_v15 = vand.u32 4294901760, %v126_v12  ;;  %3703 = vmatprep.subr.mxu0 %v4141_v0  ;;  %v174_v19 = vsub.f32 %v172_v9, %v173_v14  ;;  %v4261_v40 = vand.u32 4294901760, %v528_v35  ;;  %v668_v41 = vand.u32 4294901760, %v4250_v36 }
   0x9   :  { %v167_v22 = vsub.f32 %v165_v13, %v166_v16  ;;  %v602_v37 = vand.u32 4294901760, %v4242_v33  ;;  %v662_v43 = vsub.f32 %v4239_v32, %v661_v38  ;;  %v612_v44 = vand.u32 4294901760, %v4259_v39 }
   0xa   :  { %v128_v21 = vsub.f32 %v126_v12, %v127_v15  ;;  %v175_v28 = vand.u32 4294901760, %v174_v19  ;;  %v4278_v45 = vsub.f32 %v528_v35, %v4261_v40  ;;  %v669_v46 = vsub.f32 %v4250_v36, %v668_v41 }
   0xb   :  { %v168_v27 = vand.u32 4294901760, %v167_v22  ;;  %v603_v42 = vsub.f32 %v4242_v33, %v602_v37  ;;  %v663_v48 = vand.u32 4294901760, %v662_v43  ;;  %v613_v49 = vsub.f32 %v4259_v39, %v612_v44  ;;  %v32_v43 = vld [vmem:[%s5081_s4 + $0x18] sm:$0xff] }
   0xc   :  { %v129_v26 = vand.u32 4294901760, %v128_v21  ;;  %v622_v50 = vand.u32 4294901760, %v4278_v45  ;;  %v670_v51 = vand.u32 4294901760, %v669_v46  ;;  %v1080_v56 = vsel %vm1078_vm3, %v29_v55, 0 }
   0xd   :  { %3697 = vmatpush3.msra.mxu1 %v168_v27  ;;  %v604_v47 = vand.u32 4294901760, %v603_v42  ;;  %v614_v52 = vand.u32 4294901760, %v613_v49  ;;  %v4374_v57 = vand.u32 4294901760, %v1080_v56  ;;  %vm2085_vm4 = vcmask 1041408  }
   0xe   :  { %3694 = vmatmul.mubr.f32.vlgmr.msra.gmra.mxu0 %v129_v26  ;;  %3698 = vmatprep.subr.mxu1 %v4141_v0  ;;  %v623_v53 = vsub.f32 %v4278_v45, %v622_v50  ;;  %vm2075_vm5 = vcmask 80896   ;;  %vm2634_vm6 = vcmask 162816  }
   0xf   :  { %3704 = vmatpush3.msra.mxu0 %v165_v13  ;;  %3699 = vmatpush3.msra.mxu1 %v175_v28  ;;  %v4377_v58 = vsub.f32 %v1080_v56, %v4374_v57 }
  0x10   :  { %3705 = vmatprep.subr.mxu0 %v4141_v0  ;;  %3701 = vmatmul.mubr.f32.vlgmr.msra.gmra.mxu1 %v4204_v8  ;;  %v624_v54 = vand.u32 4294901760, %v623_v53 }
  0x11   :  { %3706 = vmatpush3.msra.mxu0 %v172_v9  ;;  %3707 = vmatprep.mubr.msk.f32.mxu0 %vm4142_vm2, %v4141_v0  ;;  %v1185_v59 = vand.u32 4294901760, %v4377_v58 }
  0x12   :  { %3710 = vmatprep.subr.mxu1 %v4141_v0  ;;  %3708 = vmatmul.mubr.f32.vlgmr.msra.gmra.mxu0 %v126_v12 }
  0x13   :  { %3711 = vmatpush3.msra.mxu1 %v4202_v7  ;;  %3717 = vmatprep.subr.mxu0 %v4141_v0  ;;  %v1186_v60 = vsub.f32 %v4377_v58, %v1185_v59 }
  0x14   :  { %3712 = vmatprep.subr.mxu1 %v4141_v0  ;;  %3718 = vmatpush3.msra.mxu0 %v166_v16 }
  0x15   :  { %3713 = vmatpush3.msra.mxu1 %v4196_v5  ;;  %3714 = vmatprep.mubr.msk.f32.mxu1 %vm4142_vm2, %v4141_v0  ;;  %v1187_v61 = vand.u32 4294901760, %v1186_v60 }
  0x16   :  { %3719 = vmatprep.subr.mxu0 %v4141_v0  ;;  %3715 = vmatmul.mubr.f32.vlgmr.msra.gmra.mxu1 %v127_v15 }
  0x17   :  { %3720 = vmatpush3.msra.mxu0 %v173_v14  ;;  %3721 = vmatprep.mubr.msk.f32.mxu0 %vm4142_vm2, %v4141_v0 }
  0x18   :  { %3724 = vmatprep.subr.mxu1 %v4141_v0  ;;  %3722 = vmatmul.mubr.f32.vlgmr.msra.gmra.mxu0 %v4204_v8 }
  0x19   :  { %3725 = vmatpush3.msra.mxu1 %v4202_v7  ;;  %3731 = vmatprep.subr.mxu0 %v4141_v0 }
  0x1a   :  { %3726 = vmatprep.subr.mxu1 %v4141_v0  ;;  %3732 = vmatpush3.msra.mxu0 %v4227_v24 }
  0x1b   :  { %3727 = vmatpush3.msra.mxu1 %v4196_v5  ;;  %3728 = vmatprep.mubr.msk.f32.mxu1 %vm4142_vm2, %v4141_v0 }
  0x1c   :  { %3733 = vmatprep.subr.mxu0 %v4141_v0  ;;  %3729 = vmatmul.mubr.f32.vlgmr.msra.gmra.mxu1 %v4204_v8 }
  0x1d   :  { %3734 = vmatpush3.msra.mxu0 %v4232_v30  ;;  %3735 = vmatprep.mubr.msk.f32.mxu0 %vm4142_vm2, %v4141_v0 }
  0x1e   :  { %3744 = vmatprep.subr.mxu1 %v4141_v0  ;;  %3736 = vmatmul.mubr.f32.vlgmr.msra.gmra.mxu0 %v604_v47 }
  0x1f   :  { %3745 = vmatpush3.msra.mxu1 %v663_v48  ;;  %3748 = vmatprep.mubr.msk.f32.mxu1 %vm4142_vm2, %v4141_v0 }
  0x20   :  { %3746 = vmatprep.subr.mxu1 %v4141_v0  ;;  %3738 = vmatprep.mubr.msk.f32.mxu0 %vm4142_vm2, %v4141_v0 }
  0x21   :  { %3747 = vmatpush3.msra.mxu1 %v670_v51  ;;  %3757 = vmatprep.subr.mxu0 %v4141_v0 }
  0x22   :  { %3749 = vmatmul.mubr.f32.vlgmr.msra.gmra.mxu1 %v4229_v25  ;;  %3739 = vmatmul.mubr.f32.gmra.mxu0 %v614_v52  ;;  %v1089_v52 = vsel %vm1078_vm3, %v32_v43, 0 }
  0x23   :  { %3751 = vmatprep.mubr.msk.f32.mxu1 %vm4142_vm2, %v4141_v0  ;;  %3741 = vmatprep.mubr.msk.f32.mxu0 %vm4142_vm2, %v4141_v0 }
  0x24   :  { %3758 = vmatpush3.msra.mxu0 %v4239_v32  ;;  %3770 = vmatprep.subr.mxu1 %v4141_v0 }
  0x25   :  { %3759 = vmatprep.subr.mxu0 %v4141_v0  ;;  %3771 = vmatpush3.msra.mxu1 %v4227_v24 }
  0x26   :  { %3752 = vmatmul.mubr.f32.gmra.mxu1 %v4244_v34  ;;  %3760 = vmatpush3.msra.mxu0 %v4250_v36 }
  0x27   :  { %3742 = vmatmul.mubr.f32.gmra.mxu0 %v624_v54  ;;  %3754 = vmatprep.mubr.msk.f32.mxu1 %vm4142_vm2, %v4141_v0 }
  0x28   :  { %3761 = vmatprep.mubr.msk.f32.mxu0 %vm4142_vm2, %v4141_v0  ;;  %3772 = vmatprep.subr.mxu1 %v4141_v0 }
  0x29   :  { %3783 = vmatprep.subr.mxu0 %v4141_v0  ;;  %3773 = vmatpush3.msra.mxu1 %v4232_v30 }
  0x2a   :  { %3755 = vmatmul.mubr.f32.gmra.mxu1 %v4261_v40  ;;  %3796 = vmatprep.subr.mxu1 %v4141_v0 }
  0x2b   :  { %3762 = vmatmul.mubr.f32.vlgmr.msra.gmra.mxu0 %v4242_v33  ;;  %3774 = vmatprep.mubr.msk.f32.mxu1 %vm4142_vm2, %v4141_v0 }
  0x2c   :  { %3764 = vmatprep.mubr.msk.f32.mxu0 %vm4142_vm2, %v4141_v0  ;;  %3784 = vmatpush3.msra.mxu0 %v661_v38  ;;  %v30_v38 = vld [vmem:[%s5081_s4 + $0x8] sm:$0xff] }
  0x2d   :  { %3785 = vmatprep.subr.mxu0 %v4141_v0  ;;  %v1083_v46 = vsel %vm1078_vm3, %v30_v38, 0 }
  0x2e   :  { %3775 = vmatmul.mubr.f32.vlgmr.msra.gmra.mxu1 %v602_v37  ;;  %3786 = vmatpush3.msra.mxu0 %v668_v41  ;;  %v31_v41 = vld [vmem:[%s5081_s4 + $0x10] sm:$0xff]  ;;  %v4399_v55 = vand.u32 4294901760, %v1083_v46 }
  0x2f   :  { %3765 = vmatmul.mubr.f32.gmra.mxu0 %v4259_v39  ;;  %3777 = vmatprep.mubr.msk.f32.mxu1 %vm4142_vm2, %v4141_v0  ;;  %v1086_v49 = vsel %vm1078_vm3, %v31_v41, 0 }
  0x30   :  { %3767 = vmatprep.mubr.msk.f32.mxu0 %vm4142_vm2, %v4141_v0  ;;  %3797 = vmatpush3.msra.mxu1 %v4227_v24 }
  0x31   :  { %3798 = vmatprep.subr.mxu1 %v4141_v0 }
  0x32   :  { %3778 = vmatmul.mubr.f32.gmra.mxu1 %v612_v44 }
  0x33   :  { %3768 = vmatmul.mubr.f32.gmra.mxu0 %v4278_v45  ;;  %3780 = vmatprep.mubr.msk.f32.mxu1 %vm4142_vm2, %v4141_v0 }
  0x34   :  { %3787 = vmatprep.mubr.msk.f32.mxu0 %vm4142_vm2, %v4141_v0  ;;  %3799 = vmatpush3.msra.mxu1 %v4232_v30 }
  0x36   :  { %3781 = vmatmul.mubr.f32.gmra.mxu1 %v622_v50 }
  0x37   :  { %3788 = vmatmul.mubr.f32.vlgmr.msra.gmra.mxu0 %v4229_v25  ;;  %3800 = vmatprep.mubr.msk.f32.mxu1 %vm4142_vm2, %v4141_v0 }
  0x38   :  { %3790 = vmatprep.mubr.msk.f32.mxu0 %vm4142_vm2, %v4141_v0 }
  0x3a   :  { %3801 = vmatmul.mubr.f32.vlgmr.msra.gmra.mxu1 %v4229_v25 }
  0x3b   :  { %3791 = vmatmul.mubr.f32.gmra.mxu0 %v4244_v34  ;;  %3803 = vmatprep.mubr.msk.f32.mxu1 %vm4142_vm2, %v4141_v0 }
  0x3c   :  { %3793 = vmatprep.mubr.msk.f32.mxu0 %vm4142_vm2, %v4141_v0 }
  0x3e   :  { %3804 = vmatmul.mubr.f32.gmra.mxu1 %v4244_v34 }
  0x3f   :  { %3794 = vmatmul.mubr.f32.gmra.mxu0 %v4261_v40  ;;  %3806 = vmatprep.mubr.msk.f32.mxu1 %vm4142_vm2, %v4141_v0 }
  0x40   :  { %3815 = vmatprep.mubr.f32.mxu0 %v1187_v61 }
  0x42   :  { %3807 = vmatmul.mubr.f32.gmra.mxu1 %v4261_v40 }
  0x43   :  { %3839 = vmatprep.mubr.f32.mxu1 %v4374_v57 }
  0xce   :  { %v131_v62 = vpop.f32.mrf.mxu0 }
  0xd0   :  { %v3695_v63 = vpop.f32.mrf.mxu0  ;;  %v212_v1 = vpop.f32.mrf.mxu1 }
  0xd1   :  { %v213_v2 = vadd.f32 %v212_v1, %v131_v62  ;;  %v4401_v62 = vand.u32 4294901760, %v1086_v49  ;;  %v33_v63 = vld [vmem:[%s5081_s4 + $0x20] sm:$0xff]  ;;  %v34_v1 = vld [vmem:[%s5081_s4 + $0x28] sm:$0xff] }
  0xd2   :  { %v288_v3 = vpop.f32.mrf.mxu0  ;;  %v3702_v4 = vpop.f32.mrf.mxu1 }
  0xd3   :  { %v289_v5 = vadd.f32 %v288_v3, %v213_v2  ;;  %v4409_v3 = vand.u32 4294901760, %v1089_v52 }
  0xd4   :  { %v3709_v6 = vpop.f32.mrf.mxu0 }
  0xd5   :  { %v35_v6 = vld [vmem:[%s5081_s4 + $0x30] sm:$0xff] }
  0xd6   :  { %v363_v7 = vpop.f32.mrf.mxu1 }
  0xd7   :  { %v364_v8 = vadd.f32 %v363_v7, %v289_v5 }
  0xd8   :  { %v440_v9 = vpop.f32.mrf.mxu0  ;;  %v3716_v10 = vpop.f32.mrf.mxu1 }
  0xd9   :  { %v441_v11 = vadd.f32 %v440_v9, %v364_v8  ;;  %v4415_v9 = vsub.f32 %v1083_v46, %v4399_v55  ;;  %v1092_v10 = vsel %vm1078_vm3, %v33_v63, 0 }
  0xda   :  { %v3723_v12 = vpop.f32.mrf.mxu0 }
  0xdc   :  { %v513_v13 = vpop.f32.mrf.mxu1 }
  0xdd   :  { %v514_v14 = vadd.f32 %v513_v13, %v441_v11  ;;  %v1095_v11 = vsel %vm1078_vm3, %v34_v1, 0 }
  0xde   :  { %v606_v15 = vpop.f32.mrf.mxu0  ;;  %v3730_v16 = vpop.f32.mrf.mxu1 }
  0xdf   :  { %517 = vst [vmem:[%s5082_s5] sm:$0x7] %v514_v14  ;;  %v4420_v14 = vsub.f32 %v1086_v49, %v4401_v62 }
  0xe0   :  { %v3737_v17 = vpop.f32.mrf.mxu0 }
  0xe2   :  { %v707_v18 = vpop.f32.mrf.mxu1  ;;  %v616_v19 = vpop.f32.mrf.mxu0 }
  0xe3   :  { %v708_v33 = vadd.f32 %v707_v18, %v606_v15  ;;  %v36_v15 = vld [vmem:[%s5081_s4 + $0x38] sm:$0xff]  ;;  %v4426_v18 = vsub.f32 %v1089_v52, %v4409_v3 }
  0xe4   :  { %v3750_v20 = vpop.f32.mrf.mxu1  ;;  %v3740_v21 = vpop.f32.mrf.mxu0 }
  0xe6   :  { %v713_v22 = vpop.f32.mrf.mxu1 }
  0xe7   :  { %v626_v23 = vpop.f32.mrf.mxu0  ;;  %v714_v39 = vadd.f32 %v713_v22, %v616_v19  ;;  %v1098_v19 = vsel %vm1078_vm3, %v35_v6, 0  ;;  %v4429_v22 = vand.u32 4294901760, %v1092_v10 }
  0xe8   :  { %v3753_v24 = vpop.f32.mrf.mxu1 }
  0xe9   :  { %v3743_v25 = vpop.f32.mrf.mxu0  ;;  %v4451_v38 = vsub.f32 %v1092_v10, %v4429_v22 }
  0xea   :  { %v719_v26 = vpop.f32.mrf.mxu1 }
  0xeb   :  { %v795_v27 = vpop.f32.mrf.mxu0  ;;  %v720_v50 = vadd.f32 %v719_v26, %v626_v23  ;;  %v4431_v23 = vand.u32 4294901760, %v1095_v11 }
  0xec   :  { %v3756_v28 = vpop.f32.mrf.mxu1  ;;  %v796_v36 = vadd.f32 %v795_v27, %v708_v33  ;;  %v1195_v27 = vand.u32 4294901760, %v4415_v9 }
  0xed   :  { %v3763_v29 = vpop.f32.mrf.mxu0  ;;  %v1101_v28 = vsel %vm1078_vm3, %v36_v15, 0 }
  0xee   :  { %v884_v30 = vpop.f32.mrf.mxu1  ;;  %v37_v29 = vld [vmem:[%s5081_s4 + $0x40] sm:$0xff] }
  0xef   :  { %v802_v31 = vpop.f32.mrf.mxu0  ;;  %v885_v47 = vadd.f32 %v884_v30, %v796_v36  ;;  %v38_v36 = vld [vmem:[%s5081_s4 + $0x48] sm:$0xff]  ;;  %v1104_v41 = vsel %vm1078_vm3, %v37_v29, 0 }
  0xf0   :  { %v3776_v32 = vpop.f32.mrf.mxu1  ;;  %v803_v44 = vadd.f32 %v802_v31, %v714_v39  ;;  %v1205_v31 = vand.u32 4294901760, %v4420_v14  ;;  %v4454_v39 = vsub.f32 %v1095_v11, %v4431_v23 }
  0xf1   :  { %v3766_v34 = vpop.f32.mrf.mxu0  ;;  %v4443_v32 = vand.u32 4294901760, %v1098_v19 }
  0xf2   :  { %v892_v35 = vpop.f32.mrf.mxu1  ;;  %v1206_v46 = vsub.f32 %v4420_v14, %v1205_v31 }
  0xf3   :  { %v809_v37 = vpop.f32.mrf.mxu0  ;;  %v893_v56 = vadd.f32 %v892_v35, %v803_v44  ;;  %v1215_v35 = vand.u32 4294901760, %v4426_v18 }
  0xf4   :  { %v3779_v40 = vpop.f32.mrf.mxu1  ;;  %v810_v60 = vadd.f32 %v809_v37, %v720_v50 }
  0xf5   :  { %v3769_v42 = vpop.f32.mrf.mxu0  ;;  %v4456_v40 = vand.u32 4294901760, %v1101_v28 }
  0xf6   :  { %v900_v45 = vpop.f32.mrf.mxu1  ;;  %v39_v42 = vld [vmem:[%s5081_s4 + $0x50] sm:$0xff] }
  0xf7   :  { %v977_v48 = vpop.f32.mrf.mxu0  ;;  %v901_v12 = vadd.f32 %v900_v45, %v810_v60  ;;  %v1196_v45 = vsub.f32 %v4415_v9, %v1195_v27  ;;  %v1110_v52 = vsel %vm1078_vm3, %v39_v42, 0  ;;  %v1235_v60 = vand.u32 4294901760, %v4454_v39 }
  0xf8   :  { %v3782_v51 = vpop.f32.mrf.mxu1  ;;  %v978_v53 = vadd.f32 %v977_v48, %v885_v47  ;;  %v4472_v47 = vsub.f32 %v1098_v19, %v4443_v32  ;;  %v1107_v48 = vsel %vm1078_vm3, %v38_v36, 0  ;;  %v4502_v6 = vand.u32 4294901760, %v1110_v52 }
  0xf9   :  { %v3789_v54 = vpop.f32.mrf.mxu0  ;;  %v4479_v51 = vand.u32 4294901760, %v1104_v41  ;;  %v1197_v63 = vand.u32 4294901760, %v1196_v45 }
  0xfa   :  { %v1062_v61 = vpop.f32.mrf.mxu1  ;;  %v1216_v54 = vsub.f32 %v4426_v18, %v1215_v35  ;;  %v1245_v11 = vand.u32 4294901760, %v4472_v47 }
  0xfb   :  { %v983_v2 = vpop.f32.mrf.mxu0  ;;  %v1063_v7 = vadd.f32 %v1062_v61, %v978_v53  ;;  %v40_v53 = vld [vmem:[%s5081_s4 + $0x58] sm:$0xff]  ;;  %v4492_v61 = vsub.f32 %v1101_v28, %v4456_v40  ;;  %v4527_v28 = vsub.f32 %v1110_v52, %v4502_v6 }
  0xfc   :  { %v984_v4 = vadd.f32 %v983_v2, %v893_v56  ;;  %v3802_v5 = vpop.f32.mrf.mxu1  ;;  %v1225_v56 = vand.u32 4294901760, %v4451_v38 }
  0xfd   :  { %v3792_v8 = vpop.f32.mrf.mxu0  ;;  %v4433_v24 = vand.u32 4294901760, %v1063_v7  ;;  %v1207_v5 = vand.u32 4294901760, %v1206_v46 }
  0xfe   :  { %v1068_v13 = vpop.f32.mrf.mxu1  ;;  %v1226_v15 = vsub.f32 %v4451_v38, %v1225_v56 }
  0xff   :  { %v1069_v16 = vadd.f32 %v1068_v13, %v984_v4  ;;  %v989_v17 = vpop.f32.mrf.mxu0  ;;  %v1345_v43 = vsub.f32 %v1063_v7, %v4433_v24  ;;  %v4499_v4 = vand.u32 4294901760, %v1107_v48  ;;  %v1113_v7 = vsel %vm1078_vm3, %v40_v53, 0 }
 0x100   :  { %v990_v20 = vadd.f32 %v989_v17, %v901_v12  ;;  %v3805_v21 = vpop.f32.mrf.mxu1  ;;  %v4510_v12 = vsub.f32 %v1104_v41, %v4479_v51  ;;  %v1217_v13 = vand.u32 4294901760, %v1216_v54  ;;  %v1255_v17 = vand.u32 4294901760, %v4492_v61 }
 0x101   :  { %v4435_v25 = vand.u32 4294901760, %v1069_v16  ;;  %v3795_v26 = vpop.f32.mrf.mxu0  ;;  %v4497_v2 = vand.u32 4294901760, %v1345_v43  ;;  %v4522_v21 = vsub.f32 %v1107_v48, %v4499_v4  ;;  %v1227_v36 = vand.u32 4294901760, %v1226_v15 }
 0x102   :  { %v1074_v30 = vpop.f32.mrf.mxu1  ;;  %v4524_v26 = vand.u32 4294901760, %v1113_v7  ;;  %v1256_v42 = vsub.f32 %v4492_v61, %v1255_v17  ;;  %v1285_v48 = vand.u32 4294901760, %v4527_v28 }
 0x103   :  { %v1338_v33 = vsub.f32 %v1069_v16, %v4435_v25  ;;  %v1075_v34 = vadd.f32 %v1074_v30, %v990_v20  ;;  %v1236_v16 = vsub.f32 %v4454_v39, %v1235_v60  ;;  %v1347_v20 = vsub.f32 %v1345_v43, %v4497_v2 }
 0x104   :  { %v3808_v37 = vpop.f32.mrf.mxu1  ;;  %v1246_v30 = vsub.f32 %v4472_v47, %v1245_v11  ;;  %v1275_v45 = vand.u32 4294901760, %v4522_v21  ;;  %v4538_v46 = vsub.f32 %v1113_v7, %v4524_v26  ;;  %v1257_v52 = vand.u32 4294901760, %v1256_v42 }
 0x105   :  { %v4463_v44 = vand.u32 4294901760, %v1075_v34  ;;  %v4477_v50 = vand.u32 4294901760, %v1338_v33  ;;  %v1237_v37 = vand.u32 4294901760, %v1236_v16  ;;  %v1348_v41 = vand.u32 4294901760, %v1347_v20 }
 0x106   :  { %v1276_v53 = vsub.f32 %v4522_v21, %v1275_v45  ;;  %v1295_v54 = vand.u32 4294901760, %v4538_v46 }
 0x107   :  { %v1331_v49 = vsub.f32 %v1075_v34, %v4463_v44  ;;  %3809 = vmatprep.subr.mxu0 %v4463_v44  ;;  %v1340_v10 = vsub.f32 %v1338_v33, %v4477_v50  ;;  %v1265_v34 = vand.u32 4294901760, %v4510_v12 }
 0x108   :  { %3810 = vmatpush3.msra.mxu0 %v4463_v44  ;;  %v1296_v7 = vsub.f32 %v4538_v46, %v1295_v54 }
 0x109   :  { %3811 = vmatprep.subr.mxu0 %v4435_v25  ;;  %v4495_v1 = vand.u32 4294901760, %v1331_v49  ;;  %v1341_v29 = vand.u32 4294901760, %v1340_v10 }
 0x10a   :  { %3812 = vmatpush3.msra.mxu0 %v4435_v25  ;;  %v1297_v10 = vand.u32 4294901760, %v1296_v7 }
 0x10b   :  { %3813 = vmatprep.subr.mxu0 %v4433_v24  ;;  %v1333_v8 = vsub.f32 %v1331_v49, %v4495_v1 }
 0x10c   :  { %3814 = vmatpush3.msra.mxu0 %v4433_v24 }
 0x10d   :  { %3816 = vmatmul.mubr.f32.vlgmr.msra.gmra.mxu0 %v1197_v63  ;;  %3857 = vmatprep.subr.mxu0 %v1331_v49  ;;  %v1334_v19 = vand.u32 4294901760, %v1333_v8 }
 0x10e   :  { %3858 = vmatpush3.msra.mxu0 %v1331_v49  ;;  %3818 = vmatprep.mubr.f32.mxu0 %v1207_v5  ;;  %v1266_v49 = vsub.f32 %v4510_v12, %v1265_v34  ;;  %v1277_v5 = vand.u32 4294901760, %v1276_v53 }
 0x10f   :  { %3833 = vmatprep.subr.mxu1 %v1334_v19  ;;  %3859 = vmatprep.subr.mxu0 %v1338_v33 }
 0x110   :  { %3834 = vmatpush3.msra.mxu1 %v1334_v19  ;;  %3860 = vmatpush3.msra.mxu0 %v1338_v33  ;;  %v1247_v33 = vand.u32 4294901760, %v1246_v30  ;;  %v1267_v63 = vand.u32 4294901760, %v1266_v49 }
 0x111   :  { %3819 = vmatmul.mubr.f32.gmra.mxu0 %v1217_v13  ;;  %3835 = vmatprep.subr.mxu1 %v1341_v29 }
 0x112   :  { %3861 = vmatprep.subr.mxu0 %v1345_v43  ;;  %3836 = vmatpush3.msra.mxu1 %v1341_v29 }
 0x113   :  { %3862 = vmatpush3.msra.mxu0 %v1345_v43  ;;  %3837 = vmatprep.subr.mxu1 %v1348_v41  ;;  %v1286_v43 = vsub.f32 %v4527_v28, %v1285_v48 }
 0x114   :  { %3905 = vmatprep.subr.mxu0 %v4495_v1  ;;  %3821 = vmatprep.mubr.f32.mxu0 %v1227_v36 }
 0x115   :  { %3838 = vmatpush3.msra.mxu1 %v1348_v41  ;;  %3822 = vmatmul.mubr.f32.gmra.mxu0 %v1237_v37  ;;  %v1287_v8 = vand.u32 4294901760, %v1286_v43 }
 0x116   :  { %3840 = vmatmul.mubr.f32.vlgmr.msra.gmra.mxu1 %v4399_v55  ;;  %3881 = vmatprep.subr.mxu1 %v4463_v44 }
 0x117   :  { %3882 = vmatpush3.msra.mxu1 %v4463_v44  ;;  %3824 = vmatprep.mubr.f32.mxu0 %v1247_v33 }
 0x118   :  { %3883 = vmatprep.subr.mxu1 %v4435_v25  ;;  %3842 = vmatprep.mubr.f32.mxu1 %v4401_v62 }
 0x119   :  { %3884 = vmatpush3.msra.mxu1 %v4435_v25  ;;  %3825 = vmatmul.mubr.f32.gmra.mxu0 %v1257_v52 }
 0x11a   :  { %3843 = vmatmul.mubr.f32.gmra.mxu1 %v4409_v3  ;;  %3885 = vmatprep.subr.mxu1 %v4433_v24 }
 0x11b   :  { %3886 = vmatpush3.msra.mxu1 %v4433_v24  ;;  %3827 = vmatprep.mubr.f32.mxu0 %v1267_v63 }
 0x11c   :  { %3929 = vmatprep.subr.mxu1 %v4463_v44  ;;  %3845 = vmatprep.mubr.f32.mxu1 %v4429_v22 }
 0x11d   :  { %3828 = vmatmul.mubr.f32.gmra.mxu0 %v1277_v5 }
 0x11e   :  { %3846 = vmatmul.mubr.f32.gmra.mxu1 %v4431_v23  ;;  %3830 = vmatprep.mubr.f32.mxu0 %v1287_v8 }
 0x11f   :  { %3848 = vmatprep.mubr.f32.mxu1 %v4443_v32 }
 0x121   :  { %3831 = vmatmul.mubr.f32.gmra.mxu0 %v1297_v10 }
 0x122   :  { %3849 = vmatmul.mubr.f32.gmra.mxu1 %v4456_v40  ;;  %3863 = vmatprep.mubr.f32.mxu0 %v4377_v58 }
 0x123   :  { %3851 = vmatprep.mubr.f32.mxu1 %v4479_v51 }
 0x125   :  { %3864 = vmatmul.mubr.f32.vlgmr.msra.gmra.mxu0 %v4415_v9 }
 0x126   :  { %3852 = vmatmul.mubr.f32.gmra.mxu1 %v4499_v4  ;;  %3906 = vmatpush3.msra.mxu0 %v4495_v1 }
 0x127   :  { %3907 = vmatprep.subr.mxu0 %v4477_v50  ;;  %3854 = vmatprep.mubr.f32.mxu1 %v4502_v6 }
 0x128   :  { %3908 = vmatpush3.msra.mxu0 %v4477_v50  ;;  %3866 = vmatprep.mubr.f32.mxu0 %v4420_v14  ;;  %v28_v50 = vld [vmem:[%s5078_s3 + $0x28] sm:$0x3] }
 0x129   :  { %3909 = vmatprep.subr.mxu0 %v4497_v2  ;;  %3867 = vmatmul.mubr.f32.gmra.mxu0 %v4426_v18  ;;  %v2087_v58 = vsel %vm2085_vm4, %v28_v50, 0 }
 0x12a   :  { %3855 = vmatmul.mubr.f32.gmra.mxu1 %v4524_v26  ;;  %3910 = vmatpush3.msra.mxu0 %v4497_v2  ;;  %v4607_v9 = vand.u32 4294901760, %v2087_v58 }
 0x12b   :  { %3869 = vmatprep.mubr.f32.mxu0 %v4451_v38  ;;  %3887 = vmatprep.mubr.f32.mxu1 %v1185_v59  ;;  %v27_v59 = vld [vmem:[%s5078_s3 + $0x20] sm:$0xff] }
 0x12c   :  { %3953 = vmatprep.subr.mxu0 %v4141_v0  ;;  %v4613_v14 = vand.u32 4294901760, %v27_v59  ;;  %v4621_v18 = vsub.f32 %v2087_v58, %v4607_v9 }
 0x12d   :  { %3870 = vmatmul.mubr.f32.gmra.mxu0 %v4454_v39  ;;  %v2073_v39 = vld [vmem:[%s5083_s2 + $0x8] sm:$0xff] }
 0x12e   :  { %3888 = vmatmul.mubr.f32.vlgmr.msra.gmra.mxu1 %v1195_v27  ;;  %3872 = vmatprep.mubr.f32.mxu0 %v4472_v47  ;;  %v2072_v27 = vld [vmem:[%s5083_s2] sm:$0xff] }
 0x12f   :  { %3930 = vmatpush3.msra.mxu1 %v4463_v44  ;;  %3890 = vmatprep.mubr.f32.mxu1 %v1205_v31 }
 0x130   :  { %3931 = vmatprep.subr.mxu1 %v4435_v25 }
 0x131   :  { %3932 = vmatpush3.msra.mxu1 %v4435_v25  ;;  %3873 = vmatmul.mubr.f32.gmra.mxu0 %v4492_v61  ;;  %v2217_v25 = vand.u32 4294901760, %v4621_v18  ;;  %v2074_v61 = vld [vmem:[%s5083_s2 + $0x10] sm:$0xf] }
 0x132   :  { %3933 = vmatprep.subr.mxu1 %v4433_v24  ;;  %3891 = vmatmul.mubr.f32.gmra.mxu1 %v1215_v35  ;;  %v2077_v35 = vsel %vm2075_vm5, %v2072_v27, 0 }
 0x133   :  { %3934 = vmatpush3.msra.mxu1 %v4433_v24  ;;  %3875 = vmatprep.mubr.f32.mxu0 %v4510_v12  ;;  %v4625_v24 = vsub.f32 %v27_v59, %v4613_v14  ;;  %v2218_v38 = vsub.f32 %v4621_v18, %v2217_v25  ;;  %v4653_v44 = vand.u32 4294901760, %v2077_v35 }
 0x134   :  { %3893 = vmatprep.mubr.f32.mxu1 %v1225_v56  ;;  %3966 = vmatprep.subr.mxu1 %v4141_v0  ;;  %v2080_v56 = vsel %vm2075_vm5, %v2073_v39, 0 }
 0x135   :  { %3876 = vmatmul.mubr.f32.gmra.mxu0 %v4522_v21  ;;  %v2224_v31 = vand.u32 4294901760, %v4625_v24  ;;  %v4670_v1 = vsub.f32 %v2077_v35, %v4653_v44 }
 0x136   :  { %3894 = vmatmul.mubr.f32.gmra.mxu1 %v1235_v60  ;;  %3878 = vmatprep.mubr.f32.mxu0 %v4527_v28  ;;  %v2219_v60 = vand.u32 4294901760, %v2218_v38 }
 0x137   :  { %3896 = vmatprep.mubr.f32.mxu1 %v1245_v11  ;;  %v2225_v47 = vsub.f32 %v4625_v24, %v2224_v31  ;;  %v4672_v11 = vand.u32 4294901760, %v2080_v56  ;;  %v2158_v12 = vand.u32 4294901760, %v4670_v1 }
 0x139   :  { %3879 = vmatmul.mubr.f32.gmra.mxu0 %v4538_v46  ;;  %v2226_v2 = vand.u32 4294901760, %v2225_v47  ;;  %v2167_v13 = vsub.f32 %v2080_v56, %v4672_v11 }
 0x13a   :  { %3897 = vmatmul.mubr.f32.gmra.mxu1 %v1255_v17  ;;  %3911 = vmatprep.mubr.f32.mxu0 %v4374_v57 }
 0x13b   :  { %3899 = vmatprep.mubr.f32.mxu1 %v1265_v34 }
 0x13d   :  { %3912 = vmatmul.mubr.f32.vlgmr.msra.gmra.mxu0 %v4399_v55 }
 0x13e   :  { %3900 = vmatmul.mubr.f32.gmra.mxu1 %v1275_v45  ;;  %3914 = vmatprep.mubr.f32.mxu0 %v4401_v62 }
 0x13f   :  { %3902 = vmatprep.mubr.f32.mxu1 %v1285_v48  ;;  %3954 = vmatpush3.msra.mxu0 %v4607_v9 }
 0x140   :  { %3955 = vmatprep.subr.mxu0 %v4141_v0 }
 0x141   :  { %3915 = vmatmul.mubr.f32.gmra.mxu0 %v4409_v3 }
 0x142   :  { %3903 = vmatmul.mubr.f32.gmra.mxu1 %v1295_v54  ;;  %3917 = vmatprep.mubr.f32.mxu0 %v4429_v22 }
 0x143   :  { %3935 = vmatprep.mubr.f32.mxu1 %v4374_v57  ;;  %3956 = vmatpush3.msra.mxu0 %v4613_v14  ;;  %v2083_v57 = vsel %vm2075_vm5, %v2074_v61, 0 }
 0x144   :  { %3979 = vmatprep.subr.mxu0 %v4141_v0  ;;  %v4682_v15 = vand.u32 4294901760, %v2083_v57 }
 0x145   :  { %3918 = vmatmul.mubr.f32.gmra.mxu0 %v4431_v23 }
 0x146   :  { %3936 = vmatmul.mubr.f32.vlgmr.msra.gmra.mxu1 %v4399_v55  ;;  %3920 = vmatprep.mubr.f32.mxu0 %v4443_v32  ;;  %v2159_v55 = vsub.f32 %v4670_v1, %v2158_v12  ;;  %v2177_v16 = vsub.f32 %v2083_v57, %v4682_v15 }
 0x147   :  { %3938 = vmatprep.mubr.f32.mxu1 %v4401_v62  ;;  %3967 = vmatpush3.msra.mxu1 %v2219_v60  ;;  %v2168_v62 = vand.u32 4294901760, %v2167_v13 }
 0x148   :  { %3968 = vmatprep.subr.mxu1 %v4141_v0 }
 0x149   :  { %3921 = vmatmul.mubr.f32.gmra.mxu0 %v4456_v40  ;;  %3969 = vmatpush3.msra.mxu1 %v2226_v2  ;;  %v2169_v17 = vsub.f32 %v2167_v13, %v2168_v62 }
 0x14a   :  { %3939 = vmatmul.mubr.f32.gmra.mxu1 %v4409_v3  ;;  %3923 = vmatprep.mubr.f32.mxu0 %v4479_v51  ;;  %v2160_v3 = vand.u32 4294901760, %v2159_v55 }
 0x14b   :  { %3941 = vmatprep.mubr.f32.mxu1 %v4429_v22  ;;  %3992 = vmatprep.subr.mxu1 %v4141_v0  ;;  %v2178_v22 = vand.u32 4294901760, %v2177_v16  ;;  %v2170_v19 = vand.u32 4294901760, %v2169_v17 }
 0x14d   :  { %3924 = vmatmul.mubr.f32.gmra.mxu0 %v4499_v4  ;;  %v2179_v20 = vsub.f32 %v2177_v16, %v2178_v22 }
 0x14e   :  { %3942 = vmatmul.mubr.f32.gmra.mxu1 %v4431_v23  ;;  %3926 = vmatprep.mubr.f32.mxu0 %v4502_v6 }
 0x14f   :  { %3944 = vmatprep.mubr.f32.mxu1 %v4443_v32  ;;  %v2180_v23 = vand.u32 4294901760, %v2179_v20  ;;  %v41_v32 = vld [vmem:[%s5081_s4 + $0x60] sm:$0xff] }
 0x151   :  { %3927 = vmatmul.mubr.f32.gmra.mxu0 %v4524_v26 }
 0x152   :  { %3945 = vmatmul.mubr.f32.gmra.mxu1 %v4456_v40  ;;  %3957 = vmatprep.mubr.msk.f32.mxu0 %vm4142_vm2, %v4141_v0  ;;  %v2636_v40 = vsel %vm2634_vm6, %v41_v32, 0 }
 0x153   :  { %3947 = vmatprep.mubr.f32.mxu1 %v4479_v51  ;;  %v4766_v51 = vand.u32 4294901760, %v2636_v40 }
 0x155   :  { %3958 = vmatmul.mubr.f32.vlgmr.msra.gmra.mxu0 %v2160_v3  ;;  %5091 = vst [vmem:[#allocation2_spill] sm:$0xff] %v4766_v51 }
 0x156   :  { %3948 = vmatmul.mubr.f32.gmra.mxu1 %v4499_v4  ;;  %3960 = vmatprep.mubr.msk.f32.mxu0 %vm4142_vm2, %v4141_v0  ;;  %v4769_v4 = vsub.f32 %v2636_v40, %v4766_v51 }
 0x157   :  { %3950 = vmatprep.mubr.f32.mxu1 %v4502_v6  ;;  %3980 = vmatpush3.msra.mxu0 %v4621_v18 }
 0x158   :  { %3981 = vmatprep.subr.mxu0 %v4141_v0  ;;  %5092 = vst [vmem:[#allocation3_spill] sm:$0xff] %v4769_v4  ;;  %v5086_v6 = vand.u32 4294901760, %v4769_v4 }
 0x159   :  { %3961 = vmatmul.mubr.f32.gmra.mxu0 %v2170_v19 }
 0x15a   :  { %3951 = vmatmul.mubr.f32.gmra.mxu1 %v4524_v26  ;;  %3963 = vmatprep.mubr.msk.f32.mxu0 %vm4142_vm2, %v4141_v0 }
 0x15b   :  { %3970 = vmatprep.mubr.msk.f32.mxu1 %vm4142_vm2, %v4141_v0  ;;  %3982 = vmatpush3.msra.mxu0 %v4625_v24 }
 0x15c   :  { %4005 = vmatprep.subr.mxu0 %v4141_v0 }
 0x15d   :  { %3964 = vmatmul.mubr.f32.gmra.mxu0 %v2180_v23 }
 0x15e   :  { %3971 = vmatmul.mubr.f32.vlgmr.msra.gmra.mxu1 %v4653_v44  ;;  %3983 = vmatprep.mubr.msk.f32.mxu0 %vm4142_vm2, %v4141_v0 }
 0x15f   :  { %3973 = vmatprep.mubr.msk.f32.mxu1 %vm4142_vm2, %v4141_v0  ;;  %3993 = vmatpush3.msra.mxu1 %v4607_v9 }
 0x160   :  { %3994 = vmatprep.subr.mxu1 %v4141_v0 }
 0x161   :  { %3984 = vmatmul.mubr.f32.vlgmr.msra.gmra.mxu0 %v4670_v1  ;;  %3995 = vmatpush3.msra.mxu1 %v4613_v14 }
 0x162   :  { %3974 = vmatmul.mubr.f32.gmra.mxu1 %v4672_v11  ;;  %3986 = vmatprep.mubr.msk.f32.mxu0 %vm4142_vm2, %v4141_v0 }
 0x163   :  { %3976 = vmatprep.mubr.msk.f32.mxu1 %vm4142_vm2, %v4141_v0  ;;  %4006 = vmatpush3.msra.mxu0 %v2217_v25 }
 0x164   :  { %4007 = vmatprep.subr.mxu0 %v4141_v0  ;;  %4018 = vmatprep.subr.mxu1 %v4141_v0 }
 0x165   :  { %3987 = vmatmul.mubr.f32.gmra.mxu0 %v2167_v13 }
 0x166   :  { %3977 = vmatmul.mubr.f32.gmra.mxu1 %v4682_v15  ;;  %3989 = vmatprep.mubr.msk.f32.mxu0 %vm4142_vm2, %v4141_v0 }
 0x167   :  { %3996 = vmatprep.mubr.msk.f32.mxu1 %vm4142_vm2, %v4141_v0  ;;  %4008 = vmatpush3.msra.mxu0 %v2224_v31 }
 0x169   :  { %3990 = vmatmul.mubr.f32.gmra.mxu0 %v2177_v16 }
 0x16a   :  { %3997 = vmatmul.mubr.f32.vlgmr.msra.gmra.mxu1 %v2158_v12  ;;  %4009 = vmatprep.mubr.msk.f32.mxu0 %vm4142_vm2, %v4141_v0 }
 0x16b   :  { %3999 = vmatprep.mubr.msk.f32.mxu1 %vm4142_vm2, %v4141_v0  ;;  %4019 = vmatpush3.msra.mxu1 %v4607_v9 }
 0x16c   :  { %4020 = vmatprep.subr.mxu1 %v4141_v0 }
 0x16d   :  { %4010 = vmatmul.mubr.f32.vlgmr.msra.gmra.mxu0 %v4653_v44  ;;  %4021 = vmatpush3.msra.mxu1 %v4613_v14 }
 0x16e   :  { %4000 = vmatmul.mubr.f32.gmra.mxu1 %v2168_v62  ;;  %4012 = vmatprep.mubr.msk.f32.mxu0 %vm4142_vm2, %v4141_v0 }
 0x16f   :  { %4002 = vmatprep.mubr.msk.f32.mxu1 %vm4142_vm2, %v4141_v0 }
 0x171   :  { %4013 = vmatmul.mubr.f32.gmra.mxu0 %v4672_v11 }
 0x172   :  { %4003 = vmatmul.mubr.f32.gmra.mxu1 %v2178_v22  ;;  %4015 = vmatprep.mubr.msk.f32.mxu0 %vm4142_vm2, %v4141_v0 }
 0x173   :  { %4022 = vmatprep.mubr.msk.f32.mxu1 %vm4142_vm2, %v4141_v0 }
 0x175   :  { %4016 = vmatmul.mubr.f32.gmra.mxu0 %v4682_v15 }
 0x176   :  { %4023 = vmatmul.mubr.f32.vlgmr.msra.gmra.mxu1 %v4653_v44 }
 0x177   :  { %4025 = vmatprep.mubr.msk.f32.mxu1 %vm4142_vm2, %v4141_v0 }
 0x17a   :  { %4026 = vmatmul.mubr.f32.gmra.mxu1 %v4672_v11 }
 0x17b   :  { %4028 = vmatprep.mubr.msk.f32.mxu1 %vm4142_vm2, %v4141_v0  ;;  %v2733_v0 = vsub.f32 %v4769_v4, %v5086_v6 }
 0x17d   :  { %v2734_v21 = vand.u32 4294901760, %v2733_v0 }
 0x17e   :  { %4029 = vmatmul.mubr.f32.gmra.mxu1 %v4682_v15 }
 0x17f   :  { %4055 = vmatprep.mubr.f32.mxu1 %v4766_v51  ;;  %4037 = vmatprep.mubr.f32.mxu0 %v2734_v21 }
 0x1cd   :  { %v3817_v26 = vpop.f32.mrf.mxu0 }
 0x1cf   :  { %v1189_v28 = vpop.f32.mrf.mxu0 }
 0x1d1   :  { %v3820_v29 = vpop.f32.mrf.mxu0 }
 0x1d3   :  { %v1209_v30 = vpop.f32.mrf.mxu0 }
 0x1d5   :  { %v3823_v34 = vpop.f32.mrf.mxu0 }
 0x1d6   :  { %v3841_v36 = vpop.f32.mrf.mxu1 }
 0x1d7   :  { %v4776_v37 = vpop.f32.mrf.mxu0  ;;  %v1392_v13 = vadd.f32 %v3841_v36, %v3817_v26 }
 0x1d8   :  { %v1385_v41 = vpop.f32.mrf.mxu1 }
 0x1d9   :  { %v4778_v42 = vpop.f32.mrf.mxu0  ;;  %v1386_v62 = vadd.f32 %v1385_v41, %v1189_v28 }
 0x1da   :  { %v3844_v45 = vpop.f32.mrf.mxu1 }
 0x1db   :  { %v4780_v46 = vpop.f32.mrf.mxu0  ;;  %v1404_v22 = vadd.f32 %v3844_v45, %v3820_v29 }
 0x1dc   :  { %v1397_v48 = vpop.f32.mrf.mxu1 }
 0x1dd   :  { %v4782_v33 = vpop.f32.mrf.mxu0  ;;  %v1398_v40 = vadd.f32 %v1397_v48, %v1209_v30 }
 0x1de   :  { %v3847_v49 = vpop.f32.mrf.mxu1 }
 0x1df   :  { %v4784_v52 = vpop.f32.mrf.mxu0  ;;  %v1416_v26 = vadd.f32 %v3847_v49, %v3823_v34 }
 0x1e0   :  { %v1409_v53 = vpop.f32.mrf.mxu1 }
 0x1e1   :  { %v4786_v54 = vpop.f32.mrf.mxu0 }
 0x1e2   :  { %v3850_v43 = vpop.f32.mrf.mxu1 }
 0x1e3   :  { %v4788_v63 = vpop.f32.mrf.mxu0  ;;  %v1428_v34 = vadd.f32 %v3850_v43, %v4778_v42 }
 0x1e4   :  { %v4790_v5 = vpop.f32.mrf.mxu1 }
 0x1e5   :  { %v3865_v7 = vpop.f32.mrf.mxu0 }
 0x1e6   :  { %v4792_v8 = vpop.f32.mrf.mxu1  ;;  %v1537_v16 = vadd.f32 %v3865_v7, %v1392_v13  ;;  %v1410_v13 = vadd.f32 %v1409_v53, %v4776_v37 }
 0x1e7   :  { %v1529_v10 = vpop.f32.mrf.mxu0 }
 0x1e8   :  { %v4794_v50 = vpop.f32.mrf.mxu1  ;;  %v1530_v19 = vadd.f32 %v1529_v10, %v1386_v62 }
 0x1e9   :  { %v3868_v58 = vpop.f32.mrf.mxu0 }
 0x1ea   :  { %v4796_v59 = vpop.f32.mrf.mxu1  ;;  %v1551_v0 = vadd.f32 %v3868_v58, %v1404_v22 }
 0x1eb   :  { %v1543_v9 = vpop.f32.mrf.mxu0 }
 0x1ec   :  { %v4798_v14 = vpop.f32.mrf.mxu1  ;;  %v1544_v4 = vadd.f32 %v1543_v9, %v1398_v40 }
 0x1ed   :  { %v3871_v18 = vpop.f32.mrf.mxu0  ;;  %v1446_v22 = vadd.f32 %v4798_v14, %v4788_v63 }
 0x1ee   :  { %v3889_v24 = vpop.f32.mrf.mxu1  ;;  %v1565_v45 = vadd.f32 %v3871_v18, %v1416_v26 }
 0x1ef   :  { %v1557_v25 = vpop.f32.mrf.mxu0  ;;  %v1691_v20 = vadd.f32 %v3889_v24, %v1537_v16 }
 0x1f0   :  { %v1682_v27 = vpop.f32.mrf.mxu1  ;;  %v1558_v58 = vadd.f32 %v1557_v25, %v1410_v13  ;;  %v1440_v25 = vadd.f32 %v4792_v8, %v4782_v33 }
 0x1f1   :  { %v3874_v31 = vpop.f32.mrf.mxu0  ;;  %v1683_v21 = vadd.f32 %v1682_v27, %v1530_v19 }
 0x1f2   :  { %v3892_v35 = vpop.f32.mrf.mxu1  ;;  %v1579_v18 = vadd.f32 %v3874_v31, %v1428_v34 }
 0x1f3   :  { %v4800_v38 = vpop.f32.mrf.mxu0 }
 0x1f4   :  { %v1698_v39 = vpop.f32.mrf.mxu1 }
 0x1f5   :  { %v4802_v44 = vpop.f32.mrf.mxu0  ;;  %v1699_v10 = vadd.f32 %v1698_v39, %v1544_v4  ;;  %v1422_v4 = vadd.f32 %v4790_v5, %v4780_v46  ;;  %v1434_v5 = vadd.f32 %v4794_v50, %v4784_v52 }
 0x1f6   :  { %v3895_v47 = vpop.f32.mrf.mxu1 }
 0x1f7   :  { %v4804_v56 = vpop.f32.mrf.mxu0  ;;  %v1723_v9 = vadd.f32 %v3895_v47, %v1565_v45 }
 0x1f8   :  { %v1714_v60 = vpop.f32.mrf.mxu1 }
 0x1f9   :  { %v4806_v61 = vpop.f32.mrf.mxu0 }
 0x1fa   :  { %v3898_v1 = vpop.f32.mrf.mxu1 }
 0x1fb   :  { %v4808_v2 = vpop.f32.mrf.mxu0 }
 0x1fc   :  { %5093 = vst [vmem:[#allocation4_spill] sm:$0xff] %v4808_v2  ;;  %v4810_v11 = vpop.f32.mrf.mxu1  ;;  %v1707_v2 = vadd.f32 %v3892_v35, %v1551_v0  ;;  %v1715_v35 = vadd.f32 %v1714_v60, %v1558_v58  ;;  %v1593_v60 = vadd.f32 %v4802_v44, %v1440_v25  ;;  %v42_v25 = vld [vmem:[%s5081_s4 + $0x68] sm:$0xff] }
 0x1fd   :  { %v3913_v57 = vpop.f32.mrf.mxu0 }
 0x1fe   :  { %v4812_v12 = vpop.f32.mrf.mxu1  ;;  %v1857_v6 = vadd.f32 %v3913_v57, %v1691_v20  ;;  %v1739_v57 = vadd.f32 %v3898_v1, %v1579_v18  ;;  %v1452_v1 = vadd.f32 %v4796_v59, %v4786_v54 }
 0x1ff   :  { %v1850_v15 = vpop.f32.mrf.mxu0  ;;  %v1755_v52 = vadd.f32 %v4812_v12, %v1593_v60 }
 0x200   :  { %v4814_v55 = vpop.f32.mrf.mxu1  ;;  %v1851_v28 = vadd.f32 %v1850_v15, %v1683_v21  ;;  %v1607_v20 = vadd.f32 %v4806_v61, %v1452_v1 }
 0x201   :  { %v3916_v3 = vpop.f32.mrf.mxu0 }
 0x202   :  { %v4816_v17 = vpop.f32.mrf.mxu1  ;;  %v1869_v24 = vadd.f32 %v3916_v3, %v1707_v2  ;;  %v1572_v2 = vadd.f32 %v4800_v38, %v1422_v4  ;;  %v1586_v3 = vadd.f32 %v4804_v56, %v1434_v5 }
 0x203   :  { %v1862_v23 = vpop.f32.mrf.mxu0  ;;  %v5094_v40 = vld [vmem:[#allocation4_spill] sm:$0xff]  ;;  %v1771_v21 = vadd.f32 %v4816_v17, %v1607_v20 }
 0x204   :  { %v4818_v32 = vpop.f32.mrf.mxu1  ;;  %v1863_v27 = vadd.f32 %v1862_v23, %v1699_v10  ;;  %v1731_v62 = vadd.f32 %v4810_v11, %v1572_v2  ;;  %v1747_v54 = vadd.f32 %v4814_v55, %v1586_v3  ;;  %v1600_v0 = vadd.f32 %v5094_v40, %v1446_v22  ;;  %v46_v40 = vld [vmem:[%s5081_s4 + $0x88] sm:$0xff] }
 0x205   :  { %v3919_v51 = vpop.f32.mrf.mxu0 }
 0x206   :  { %v3937_v36 = vpop.f32.mrf.mxu1  ;;  %v1881_v39 = vadd.f32 %v3919_v51, %v1723_v9  ;;  %v1763_v55 = vadd.f32 %v4818_v32, %v1600_v0 }
 0x207   :  { %v1997_v41 = vadd.f32 %v3937_v36, %v1857_v6  ;;  %v1874_v7 = vpop.f32.mrf.mxu0 }
 0x208   :  { %v1990_v29 = vpop.f32.mrf.mxu1  ;;  %v1875_v15 = vadd.f32 %v1874_v7, %v1715_v35 }
 0x209   :  { %2061 = vst [vmem:[%s5084_s6 + $0x8] sm:$0xff] %v1997_v41  ;;  %v1991_v30 = vadd.f32 %v1990_v29, %v1851_v28  ;;  %v3922_v48 = vpop.f32.mrf.mxu0 }
 0x20a   :  { %v3940_v49 = vpop.f32.mrf.mxu1  ;;  %v1893_v33 = vadd.f32 %v3922_v48, %v1739_v57 }
 0x20b   :  { %2060 = vst [vmem:[%s5084_s6] sm:$0xff] %v1991_v30  ;;  %v2009_v6 = vadd.f32 %v3940_v49, %v1869_v24  ;;  %v1886_v37 = vpop.f32.mrf.mxu0 }
 0x20c   :  { %v2002_v53 = vpop.f32.mrf.mxu1  ;;  %v1887_v50 = vadd.f32 %v1886_v37, %v1731_v62 }
 0x20d   :  { %2063 = vst [vmem:[%s5084_s6 + $0x18] sm:$0xff] %v2009_v6  ;;  %v2003_v42 = vadd.f32 %v2002_v53, %v1863_v27  ;;  %v3925_v43 = vpop.f32.mrf.mxu0 }
 0x20e   :  { %v3943_v47 = vpop.f32.mrf.mxu1  ;;  %v1905_v59 = vadd.f32 %v3925_v43, %v1755_v52 }
 0x20f   :  { %2062 = vst [vmem:[%s5084_s6 + $0x10] sm:$0xff] %v2003_v42  ;;  %v2021_v46 = vadd.f32 %v3943_v47, %v1881_v39  ;;  %v1898_v51 = vpop.f32.mrf.mxu0 }
 0x210   :  { %v2014_v31 = vpop.f32.mrf.mxu1  ;;  %v1899_v26 = vadd.f32 %v1898_v51, %v1747_v54  ;;  %v45_v54 = vld [vmem:[%s5081_s4 + $0x80] sm:$0xff] }
 0x211   :  { %2065 = vst [vmem:[%s5084_s6 + $0x28] sm:$0xff] %v2021_v46  ;;  %v2015_v8 = vadd.f32 %v2014_v31, %v1875_v15  ;;  %v3928_v38 = vpop.f32.mrf.mxu0  ;;  %v2639_v15 = vsel %vm2634_vm6, %v42_v25, 0  ;;  %v43_v46 = vld [vmem:[%s5081_s4 + $0x70] sm:$0xff]  ;;  %v44_v31 = vld [vmem:[%s5081_s4 + $0x78] sm:$0xff] }
 0x212   :  { %v3946_v16 = vpop.f32.mrf.mxu1  ;;  %v1917_v36 = vadd.f32 %v3928_v38, %v1771_v21  ;;  %v4888_v38 = vand.u32 4294901760, %v2639_v15  ;;  %v2642_v1 = vsel %vm2634_vm6, %v43_v46, 0  ;;  %v2645_v52 = vsel %vm2634_vm6, %v44_v31, 0 }
 0x213   :  { %2064 = vst [vmem:[%s5084_s6 + $0x20] sm:$0xff] %v2015_v8  ;;  %v2033_v44 = vadd.f32 %v3946_v16, %v1893_v33  ;;  %v1910_v11 = vpop.f32.mrf.mxu0  ;;  %v4892_v20 = vand.u32 4294901760, %v2642_v1 }
 0x214   :  { %v2026_v19 = vpop.f32.mrf.mxu1  ;;  %v1911_v13 = vadd.f32 %v1910_v11, %v1763_v55 }
 0x215   :  { %2067 = vst [vmem:[%s5084_s6 + $0x38] sm:$0xff] %v2033_v44  ;;  %v2027_v56 = vadd.f32 %v2026_v19, %v1887_v50  ;;  %v2162_v12 = vpop.f32.mrf.mxu0 }
 0x216   :  { %v3949_v23 = vpop.f32.mrf.mxu1 }
 0x217   :  { %2066 = vst [vmem:[%s5084_s6 + $0x30] sm:$0xff] %v2027_v56  ;;  %v2045_v63 = vadd.f32 %v3949_v23, %v1905_v59  ;;  %v3959_v14 = vpop.f32.mrf.mxu0  ;;  %v4900_v23 = vand.u32 4294901760, %v2645_v52 }
 0x218   :  { %v2038_v61 = vpop.f32.mrf.mxu1  ;;  %v2648_v14 = vsel %vm2634_vm6, %v45_v54, 0 }
 0x219   :  { %2069 = vst [vmem:[%s5084_s6 + $0x48] sm:$0xff] %v2045_v63  ;;  %v2039_v28 = vadd.f32 %v2038_v61, %v1899_v26  ;;  %v2172_v41 = vpop.f32.mrf.mxu0  ;;  %v47_v61 = vld [vmem:[%s5081_s4 + $0x90] sm:$0xff] }
 0x21a   :  { %v3952_v7 = vpop.f32.mrf.mxu1 }
 0x21b   :  { %2068 = vst [vmem:[%s5084_s6 + $0x40] sm:$0xff] %v2039_v28  ;;  %v2057_v17 = vadd.f32 %v3952_v7, %v1917_v36  ;;  %v3962_v29 = vpop.f32.mrf.mxu0  ;;  %v4910_v28 = vsub.f32 %v2642_v1, %v4892_v20 }
 0x21c   :  { %v2050_v45 = vpop.f32.mrf.mxu1  ;;  %v48_v29 = vld [vmem:[%s5081_s4 + $0x98] sm:$0xff] }
 0x21d   :  { %2071 = vst [vmem:[%s5084_s6 + $0x58] sm:$0xff] %v2057_v17  ;;  %v2051_v32 = vadd.f32 %v2050_v45, %v1911_v13  ;;  %v2182_v10 = vpop.f32.mrf.mxu0  ;;  %v4915_v17 = vsub.f32 %v2645_v52, %v4900_v23 }
 0x21e   :  { %v2263_v24 = vpop.f32.mrf.mxu1 }
 0x21f   :  { %2070 = vst [vmem:[%s5084_s6 + $0x50] sm:$0xff] %v2051_v32  ;;  %v3965_v30 = vpop.f32.mrf.mxu0  ;;  %v2264_v51 = vadd.f32 %v2263_v24, %v2162_v12  ;;  %v4898_v12 = vsub.f32 %v2639_v15, %v4888_v38  ;;  %v2654_v24 = vsel %vm2634_vm6, %v47_v61, 0 }
 0x220   :  { %v3972_v48 = vpop.f32.mrf.mxu1 }
 0x221   :  { %v2351_v34 = vpop.f32.mrf.mxu0  ;;  %v2742_v13 = vand.u32 4294901760, %v4898_v12 }
 0x222   :  { %v2269_v49 = vpop.f32.mrf.mxu1  ;;  %v2352_v33 = vadd.f32 %v2351_v34, %v2264_v51 }
 0x223   :  { %v3985_v58 = vpop.f32.mrf.mxu0  ;;  %v2270_v60 = vadd.f32 %v2269_v49, %v2172_v41  ;;  %v2651_v41 = vsel %vm2634_vm6, %v46_v40, 0 }
 0x224   :  { %v3975_v9 = vpop.f32.mrf.mxu1  ;;  %v4927_v34 = vand.u32 4294901760, %v2651_v41  ;;  %v2752_v58 = vand.u32 4294901760, %v4910_v28 }
 0x225   :  { %v2358_v27 = vpop.f32.mrf.mxu0  ;;  %v2657_v9 = vsel %vm2634_vm6, %v48_v29, 0 }
 0x226   :  { %v2275_v6 = vpop.f32.mrf.mxu1  ;;  %v2359_v16 = vadd.f32 %v2358_v27, %v2270_v60  ;;  %v4948_v25 = vand.u32 4294901760, %v2657_v9 }
 0x227   :  { %v3988_v37 = vpop.f32.mrf.mxu0  ;;  %v2276_v11 = vadd.f32 %v2275_v6, %v2182_v10  ;;  %v4922_v10 = vand.u32 4294901760, %v2648_v14 }
 0x228   :  { %v3978_v4 = vpop.f32.mrf.mxu1  ;;  %v4932_v37 = vand.u32 4294901760, %v2654_v24 }
 0x229   :  { %v2365_v53 = vpop.f32.mrf.mxu0 }
 0x22a   :  { %v2440_v18 = vpop.f32.mrf.mxu1  ;;  %v2366_v0 = vadd.f32 %v2365_v53, %v2276_v11  ;;  %v2743_v53 = vsub.f32 %v4898_v12, %v2742_v13  ;;  %v4958_v15 = vsub.f32 %v2654_v24, %v4932_v37 }
 0x22b   :  { %v3991_v35 = vpop.f32.mrf.mxu0  ;;  %v2441_v50 = vadd.f32 %v2440_v18, %v2352_v33  ;;  %v2762_v18 = vand.u32 4294901760, %v4915_v17  ;;  %v4970_v33 = vsub.f32 %v2657_v9, %v4948_v25 }
 0x22c   :  { %v3998_v39 = vpop.f32.mrf.mxu1  ;;  %v4940_v35 = vsub.f32 %v2648_v14, %v4922_v10  ;;  %v2744_v46 = vand.u32 4294901760, %v2743_v53  ;;  %v5095_v14 = vld [vmem:[#allocation3_spill] sm:$0xff] }
 0x22d   :  { %v2533_v42 = vpop.f32.mrf.mxu0  ;;  %v2763_v51 = vsub.f32 %v4915_v17, %v2762_v18  ;;  %v5096_v61 = vand.u32 4294901760, %v5095_v14 }
 0x22e   :  { %v2448_v43 = vpop.f32.mrf.mxu1  ;;  %v2534_v59 = vadd.f32 %v2533_v42, %v2441_v50 }
 0x22f   :  { %v4011_v47 = vpop.f32.mrf.mxu0  ;;  %v2449_v22 = vadd.f32 %v2448_v43, %v2359_v16  ;;  %v4946_v43 = vsub.f32 %v2651_v41, %v4927_v34  ;;  %v2764_v52 = vand.u32 4294901760, %v2763_v51 }
 0x230   :  { %v4001_v2 = vpop.f32.mrf.mxu1  ;;  %v2753_v47 = vsub.f32 %v4910_v28, %v2752_v58 }
 0x231   :  { %v2539_v57 = vpop.f32.mrf.mxu0 }
 0x232   :  { %v2456_v5 = vpop.f32.mrf.mxu1  ;;  %v2540_v21 = vadd.f32 %v2539_v57, %v2449_v22 }
 0x233   :  { %v4014_v62 = vpop.f32.mrf.mxu0  ;;  %v2457_v55 = vadd.f32 %v2456_v5, %v2366_v0  ;;  %v2772_v5 = vand.u32 4294901760, %v4940_v35 }
 0x234   :  { %v4004_v8 = vpop.f32.mrf.mxu1  ;;  %v2782_v62 = vand.u32 4294901760, %v4946_v43 }
 0x235   :  { %v2545_v3 = vpop.f32.mrf.mxu0  ;;  %v2754_v8 = vand.u32 4294901760, %v2753_v47  ;;  %v2773_v50 = vsub.f32 %v4940_v35, %v2772_v5 }
 0x236   :  { %v2618_v44 = vpop.f32.mrf.mxu1  ;;  %v2546_v45 = vadd.f32 %v2545_v3, %v2457_v55  ;;  %v2792_v3 = vand.u32 4294901760, %v4958_v15  ;;  %v2783_v22 = vsub.f32 %v4946_v43, %v2782_v62 }
 0x237   :  { %v4017_v19 = vpop.f32.mrf.mxu0  ;;  %v2619_v26 = vadd.f32 %v2618_v44, %v2534_v59 }
 0x238   :  { %v4024_v56 = vpop.f32.mrf.mxu1  ;;  %v2802_v19 = vand.u32 4294901760, %v4970_v33  ;;  %v2793_v59 = vsub.f32 %v4958_v15, %v2792_v3  ;;  %v2784_v0 = vand.u32 4294901760, %v2783_v22 }
 0x239   :  { %v4925_v30 = vand.u32 4294901760, %v2619_v26  ;;  %v2774_v56 = vand.u32 4294901760, %v2773_v50 }
 0x23a   :  { %v2624_v63 = vpop.f32.mrf.mxu1 }
 0x23b   :  { %v2625_v36 = vadd.f32 %v2624_v63, %v2540_v21  ;;  %v2852_v39 = vsub.f32 %v2619_v26, %v4925_v30  ;;  %v2803_v21 = vsub.f32 %v4970_v33, %v2802_v19  ;;  %v2794_v26 = vand.u32 4294901760, %v2793_v59 }
 0x23c   :  { %v4027_v7 = vpop.f32.mrf.mxu1 }
 0x23d   :  { %v4920_v32 = vand.u32 4294901760, %v2625_v36  ;;  %v4966_v60 = vand.u32 4294901760, %v2852_v39  ;;  %v2804_v63 = vand.u32 4294901760, %v2803_v21 }
 0x23e   :  { %v2630_v48 = vpop.f32.mrf.mxu1 }
 0x23f   :  { %v2631_v49 = vadd.f32 %v2630_v48, %v2546_v45  ;;  %v2845_v27 = vsub.f32 %v2625_v36, %v4920_v32  ;;  %v2854_v11 = vsub.f32 %v2852_v39, %v4966_v60 }
 0x240   :  { %v4030_v6 = vpop.f32.mrf.mxu1 }
 0x241   :  { %v2660_v4 = vsel %vm54_vm0, %v2631_v49, 0  ;;  %v4955_v57 = vand.u32 4294901760, %v2845_v27  ;;  %v2855_v40 = vand.u32 4294901760, %v2854_v11 }
 0x242   :  { %v4943_v42 = vand.u32 4294901760, %v2660_v4 }
 0x243   :  { %v2847_v16 = vsub.f32 %v2845_v27, %v4955_v57 }
 0x244   :  { %v2838_v2 = vsub.f32 %v2660_v4, %v4943_v42  ;;  %4031 = vmatprep.subr.mxu0 %v4943_v42 }
 0x245   :  { %4032 = vmatpush3.msra.mxu0 %v4943_v42  ;;  %v2848_v54 = vand.u32 4294901760, %v2847_v16 }
 0x246   :  { %4033 = vmatprep.subr.mxu0 %v4920_v32  ;;  %v2839_v31 = vand.u32 4294901760, %v2838_v2 }
 0x247   :  { %4034 = vmatpush3.msra.mxu0 %v4920_v32 }
 0x248   :  { %4035 = vmatprep.subr.mxu0 %v4925_v30  ;;  %v2840_v1 = vsub.f32 %v2838_v2, %v2839_v31 }
 0x249   :  { %4036 = vmatpush3.msra.mxu0 %v4925_v30 }
 0x24a   :  { %4038 = vmatmul.mubr.f32.vlgmr.msra.gmra.mxu0 %v2744_v46  ;;  %4067 = vmatprep.subr.mxu0 %v2838_v2  ;;  %v2841_v44 = vand.u32 4294901760, %v2840_v1 }
 0x24b   :  { %4068 = vmatpush3.msra.mxu0 %v2838_v2  ;;  %4040 = vmatprep.mubr.f32.mxu0 %v2754_v8 }
 0x24c   :  { %4049 = vmatprep.subr.mxu1 %v2841_v44  ;;  %4069 = vmatprep.subr.mxu0 %v2845_v27 }
 0x24d   :  { %4050 = vmatpush3.msra.mxu1 %v2841_v44  ;;  %4070 = vmatpush3.msra.mxu0 %v2845_v27 }
 0x24e   :  { %4041 = vmatmul.mubr.f32.gmra.mxu0 %v2764_v52  ;;  %4051 = vmatprep.subr.mxu1 %v2848_v54 }
 0x24f   :  { %4071 = vmatprep.subr.mxu0 %v2852_v39  ;;  %4052 = vmatpush3.msra.mxu1 %v2848_v54 }
 0x250   :  { %4072 = vmatpush3.msra.mxu0 %v2852_v39  ;;  %4053 = vmatprep.subr.mxu1 %v2855_v40 }
 0x251   :  { %4103 = vmatprep.subr.mxu0 %v2839_v31  ;;  %4043 = vmatprep.mubr.f32.mxu0 %v2774_v56 }
 0x252   :  { %4054 = vmatpush3.msra.mxu1 %v2855_v40  ;;  %4044 = vmatmul.mubr.f32.gmra.mxu0 %v2784_v0 }
 0x253   :  { %4056 = vmatmul.mubr.f32.vlgmr.msra.gmra.mxu1 %v4888_v38  ;;  %4085 = vmatprep.subr.mxu1 %v4943_v42 }
 0x254   :  { %4086 = vmatpush3.msra.mxu1 %v4943_v42  ;;  %4046 = vmatprep.mubr.f32.mxu0 %v2794_v26 }
 0x255   :  { %4087 = vmatprep.subr.mxu1 %v4920_v32  ;;  %4058 = vmatprep.mubr.f32.mxu1 %v4892_v20 }
 0x256   :  { %4088 = vmatpush3.msra.mxu1 %v4920_v32  ;;  %4047 = vmatmul.mubr.f32.gmra.mxu0 %v2804_v63 }
 0x257   :  { %4059 = vmatmul.mubr.f32.gmra.mxu1 %v4900_v23  ;;  %4089 = vmatprep.subr.mxu1 %v4925_v30 }
 0x258   :  { %4090 = vmatpush3.msra.mxu1 %v4925_v30  ;;  %4061 = vmatprep.mubr.f32.mxu1 %v4922_v10 }
 0x259   :  { %4121 = vmatprep.subr.mxu1 %v4943_v42  ;;  %4073 = vmatprep.mubr.f32.mxu0 %v5095_v14 }
 0x25a   :  { %4074 = vmatmul.mubr.f32.vlgmr.msra.gmra.mxu0 %v4898_v12  ;;  %v5097_v12 = vld [vmem:[#allocation2_spill] sm:$0xff] }
 0x25b   :  { %4062 = vmatmul.mubr.f32.gmra.mxu1 %v4927_v34  ;;  %4104 = vmatpush3.msra.mxu0 %v2839_v31 }
 0x25c   :  { %4105 = vmatprep.subr.mxu0 %v4955_v57  ;;  %4064 = vmatprep.mubr.f32.mxu1 %v4932_v37 }
 0x25d   :  { %4106 = vmatpush3.msra.mxu0 %v4955_v57  ;;  %4076 = vmatprep.mubr.f32.mxu0 %v4910_v28 }
 0x25e   :  { %4107 = vmatprep.subr.mxu0 %v4966_v60  ;;  %4077 = vmatmul.mubr.f32.gmra.mxu0 %v4915_v17 }
 0x25f   :  { %4065 = vmatmul.mubr.f32.gmra.mxu1 %v4948_v25  ;;  %4108 = vmatpush3.msra.mxu0 %v4966_v60 }
 0x260   :  { %4079 = vmatprep.mubr.f32.mxu0 %v4940_v35  ;;  %4091 = vmatprep.mubr.f32.mxu1 %v5096_v61 }
 0x262   :  { %4080 = vmatmul.mubr.f32.gmra.mxu0 %v4946_v43 }
 0x263   :  { %4092 = vmatmul.mubr.f32.vlgmr.msra.gmra.mxu1 %v2742_v13  ;;  %4082 = vmatprep.mubr.f32.mxu0 %v4958_v15 }
 0x264   :  { %4122 = vmatpush3.msra.mxu1 %v4943_v42  ;;  %4094 = vmatprep.mubr.f32.mxu1 %v2752_v58 }
 0x265   :  { %4123 = vmatprep.subr.mxu1 %v4920_v32 }
 0x266   :  { %4124 = vmatpush3.msra.mxu1 %v4920_v32  ;;  %4083 = vmatmul.mubr.f32.gmra.mxu0 %v4970_v33 }
 0x267   :  { %4125 = vmatprep.subr.mxu1 %v4925_v30  ;;  %4095 = vmatmul.mubr.f32.gmra.mxu1 %v2762_v18 }
 0x268   :  { %4126 = vmatpush3.msra.mxu1 %v4925_v30  ;;  %4097 = vmatprep.mubr.f32.mxu1 %v2772_v5 }
 0x269   :  { %4109 = vmatprep.mubr.f32.mxu0 %v5097_v12 }
 0x26a   :  { %4110 = vmatmul.mubr.f32.vlgmr.msra.gmra.mxu0 %v4888_v38 }
 0x26b   :  { %4098 = vmatmul.mubr.f32.gmra.mxu1 %v2782_v62  ;;  %4112 = vmatprep.mubr.f32.mxu0 %v4892_v20 }
 0x26c   :  { %4100 = vmatprep.mubr.f32.mxu1 %v2792_v3 }
 0x26e   :  { %4113 = vmatmul.mubr.f32.gmra.mxu0 %v4900_v23 }
 0x26f   :  { %4101 = vmatmul.mubr.f32.gmra.mxu1 %v2802_v19  ;;  %4115 = vmatprep.mubr.f32.mxu0 %v4922_v10 }
 0x270   :  { %4127 = vmatprep.mubr.f32.mxu1 %v5097_v12 }
 0x272   :  { %4116 = vmatmul.mubr.f32.gmra.mxu0 %v4927_v34 }
 0x273   :  { %4128 = vmatmul.mubr.f32.vlgmr.msra.gmra.mxu1 %v4888_v38  ;;  %4118 = vmatprep.mubr.f32.mxu0 %v4932_v37 }
 0x274   :  { %4130 = vmatprep.mubr.f32.mxu1 %v4892_v20 }
 0x276   :  { %4119 = vmatmul.mubr.f32.gmra.mxu0 %v4948_v25 }
 0x277   :  { %4131 = vmatmul.mubr.f32.gmra.mxu1 %v4900_v23 }
 0x278   :  { %4133 = vmatprep.mubr.f32.mxu1 %v4922_v10 }
 0x27b   :  { %4134 = vmatmul.mubr.f32.gmra.mxu1 %v4927_v34 }
 0x27c   :  { %4136 = vmatprep.mubr.f32.mxu1 %v4932_v37 }
 0x27f   :  { %4137 = vmatmul.mubr.f32.gmra.mxu1 %v4948_v25 }
 0x30a   :  { %v4039_v55 = vpop.f32.mrf.mxu0 }
 0x30c   :  { %v2736_v36 = vpop.f32.mrf.mxu0 }
 0x30e   :  { %v4042_v28 = vpop.f32.mrf.mxu0 }
 0x310   :  { %v2756_v38 = vpop.f32.mrf.mxu0 }
 0x312   :  { %v4045_v41 = vpop.f32.mrf.mxu0 }
 0x313   :  { %v4057_v7 = vpop.f32.mrf.mxu1 }
 0x314   :  { %v2776_v13 = vpop.f32.mrf.mxu0  ;;  %v2899_v43 = vadd.f32 %v4057_v7, %v4039_v55 }
 0x315   :  { %v2892_v20 = vpop.f32.mrf.mxu1 }
 0x316   :  { %v4048_v17 = vpop.f32.mrf.mxu0  ;;  %v2893_v2 = vadd.f32 %v2892_v20, %v2736_v36 }
 0x317   :  { %v4060_v29 = vpop.f32.mrf.mxu1 }
 0x318   :  { %v2796_v45 = vpop.f32.mrf.mxu0  ;;  %v2911_v51 = vadd.f32 %v4060_v29, %v4042_v28 }
 0x319   :  { %v2904_v23 = vpop.f32.mrf.mxu1 }
 0x31a   :  { %v4075_v32 = vpop.f32.mrf.mxu0  ;;  %v2905_v33 = vadd.f32 %v2904_v23, %v2756_v38 }
 0x31b   :  { %v4063_v10 = vpop.f32.mrf.mxu1  ;;  %v3020_v57 = vadd.f32 %v4075_v32, %v2899_v43 }
 0x31c   :  { %v3012_v24 = vpop.f32.mrf.mxu0  ;;  %v2923_v52 = vadd.f32 %v4063_v10, %v4045_v41 }
 0x31d   :  { %v2916_v30 = vpop.f32.mrf.mxu1  ;;  %v3013_v5 = vadd.f32 %v3012_v24, %v2893_v2 }
 0x31e   :  { %v4078_v48 = vpop.f32.mrf.mxu0  ;;  %v2917_v54 = vadd.f32 %v2916_v30, %v2776_v13 }
 0x31f   :  { %v4066_v34 = vpop.f32.mrf.mxu1  ;;  %v3034_v8 = vadd.f32 %v4078_v48, %v2911_v51 }
 0x320   :  { %v3026_v49 = vpop.f32.mrf.mxu0  ;;  %v2935_v63 = vadd.f32 %v4066_v34, %v4048_v17 }
 0x321   :  { %v2928_v58 = vpop.f32.mrf.mxu1  ;;  %v3027_v44 = vadd.f32 %v3026_v49, %v2905_v33 }
 0x322   :  { %v4081_v9 = vpop.f32.mrf.mxu0  ;;  %v2929_v28 = vadd.f32 %v2928_v58, %v2796_v45 }
 0x323   :  { %v4093_v27 = vpop.f32.mrf.mxu1  ;;  %v3048_v40 = vadd.f32 %v4081_v9, %v2923_v52 }
 0x324   :  { %v3040_v6 = vpop.f32.mrf.mxu0  ;;  %v3146_v31 = vadd.f32 %v4093_v27, %v3020_v57 }
 0x325   :  { %v3137_v37 = vpop.f32.mrf.mxu1  ;;  %v3041_v61 = vadd.f32 %v3040_v6, %v2917_v54 }
 0x326   :  { %v4084_v4 = vpop.f32.mrf.mxu0  ;;  %v3138_v1 = vadd.f32 %v3137_v37, %v3013_v5 }
 0x327   :  { %v4096_v53 = vpop.f32.mrf.mxu1  ;;  %v3062_v7 = vadd.f32 %v4084_v4, %v2935_v63 }
 0x328   :  { %v3054_v18 = vpop.f32.mrf.mxu0  ;;  %v3162_v11 = vadd.f32 %v4096_v53, %v3034_v8 }
 0x329   :  { %v3153_v35 = vpop.f32.mrf.mxu1  ;;  %v3055_v23 = vadd.f32 %v3054_v18, %v2929_v28 }
 0x32a   :  { %v4111_v39 = vpop.f32.mrf.mxu0  ;;  %v3154_v0 = vadd.f32 %v3153_v35, %v3027_v44 }
 0x32b   :  { %v4099_v42 = vpop.f32.mrf.mxu1  ;;  %v3280_v16 = vadd.f32 %v4111_v39, %v3146_v31 }
 0x32c   :  { %v3273_v25 = vpop.f32.mrf.mxu0  ;;  %v3178_v12 = vadd.f32 %v4099_v42, %v3048_v40 }
 0x32d   :  { %v3169_v47 = vpop.f32.mrf.mxu1  ;;  %v3274_v22 = vadd.f32 %v3273_v25, %v3138_v1 }
 0x32e   :  { %v4114_v15 = vpop.f32.mrf.mxu0  ;;  %v3170_v13 = vadd.f32 %v3169_v47, %v3041_v61 }
 0x32f   :  { %v4102_v46 = vpop.f32.mrf.mxu1  ;;  %v3292_v21 = vadd.f32 %v4114_v15, %v3162_v11 }
 0x330   :  { %v3285_v60 = vpop.f32.mrf.mxu0  ;;  %v3194_v32 = vadd.f32 %v4102_v46, %v3062_v7 }
 0x331   :  { %v3185_v62 = vpop.f32.mrf.mxu1  ;;  %v3286_v55 = vadd.f32 %v3285_v60, %v3154_v0 }
 0x332   :  { %v4117_v3 = vpop.f32.mrf.mxu0  ;;  %v3186_v48 = vadd.f32 %v3185_v62, %v3055_v23 }
 0x333   :  { %v4129_v50 = vpop.f32.mrf.mxu1  ;;  %v3304_v20 = vadd.f32 %v4117_v3, %v3178_v12 }
 0x334   :  { %v3396_v19 = vadd.f32 %v4129_v50, %v3280_v16  ;;  %v3297_v59 = vpop.f32.mrf.mxu0 }
 0x335   :  { %v3389_v56 = vpop.f32.mrf.mxu1  ;;  %v3298_v10 = vadd.f32 %v3297_v59, %v3170_v13 }
 0x336   :  { %3436 = vst [vmem:[%s5085_s7 + $0x8] sm:$0xff] %v3396_v19  ;;  %v3390_v26 = vadd.f32 %v3389_v56, %v3274_v22  ;;  %v4120_v38 = vpop.f32.mrf.mxu0 }
 0x337   :  { %v4132_v14 = vpop.f32.mrf.mxu1  ;;  %v3316_v34 = vadd.f32 %v4120_v38, %v3194_v32 }
 0x338   :  { %3435 = vst [vmem:[%s5085_s7] sm:$0xff] %v3390_v26  ;;  %v3408_v36 = vadd.f32 %v4132_v14, %v3292_v21  ;;  %v3309_v45 = vpop.f32.mrf.mxu0 }
 0x339   :  { %v3401_v41 = vpop.f32.mrf.mxu1  ;;  %v3310_v9 = vadd.f32 %v3309_v45, %v3186_v48 }
 0x33a   :  { %3438 = vst [vmem:[%s5085_s7 + $0x18] sm:$0xff] %v3408_v36  ;;  %v3402_v17 = vadd.f32 %v3401_v41, %v3286_v55 }
 0x33b   :  { %v4135_v29 = vpop.f32.mrf.mxu1 }
 0x33c   :  { %3437 = vst [vmem:[%s5085_s7 + $0x10] sm:$0xff] %v3402_v17  ;;  %v3420_v24 = vadd.f32 %v4135_v29, %v3304_v20 }
 0x33d   :  { %v3413_v30 = vpop.f32.mrf.mxu1 }
 0x33e   :  { %3440 = vst [vmem:[%s5085_s7 + $0x28] sm:$0xff] %v3420_v24  ;;  %v3414_v49 = vadd.f32 %v3413_v30, %v3298_v10 }
 0x33f   :  { %v4138_v58 = vpop.f32.mrf.mxu1 }
 0x340   :  { %3439 = vst [vmem:[%s5085_s7 + $0x20] sm:$0xff] %v3414_v49  ;;  %v3432_v27 = vadd.f32 %v4138_v58, %v3316_v34 }
 0x341   :  { %v3425_v6 = vpop.f32.mrf.mxu1 }
 0x342   :  { %3442 = vst [vmem:[%s5085_s7 + $0x38] sm:$0xff] %v3432_v27  ;;  %v3426_v37 = vadd.f32 %v3425_v6, %v3310_v9 }
 0x344   :  { %3441 = vst [vmem:[%s5085_s7 + $0x30] sm:$0xff] %v3426_v37 }

</bundles_post_ra>
